<compile_context>
chip_gen: v7x
topology: tpu7x:2x2x1
jax: 0.10.0
libtpu: 0.0.40
codegen_flags: <defaults>
</compile_context>

<pallas_src>
import math
from functools import partial

import jax
import jax.numpy as jnp
from jax import lax
from jax.experimental import pallas as pl
from jax.experimental.pallas import tpu as pltpu

_BN_EPS = 1e-5
_INV_SQRT2 = 1.0 / math.sqrt(2.0)
_INV_1414 = 1.0 / 1.414          # module divides by 1.414; multiply by the reciprocal


def _round_up(v, m):
    return (v + m - 1) // m * m


def _erf_poly(x):
    # Abramowitz & Stegun 7.1.26 rational approximation (|err| < 1.5e-7), built only
    # from ops guaranteed to lower in Mosaic (exp / mul / add / where).
    a1, a2, a3, a4, a5 = 0.254829592, -0.284496736, 1.421413741, -1.453152027, 1.061405429
    p = 0.3275911
    ax = jnp.abs(x)
    t = 1.0 / (1.0 + p * ax)
    poly = ((((a5 * t + a4) * t + a3) * t + a2) * t + a1) * t
    y = 1.0 - poly * jnp.exp(-ax * ax)
    return jnp.where(x >= 0, y, -y)


def _gelu_exact(x):
    # nn.GELU default = exact erf-based GELU.
    return 0.5 * x * (1.0 + _erf_poly(x * _INV_SQRT2))


def _fused_kernel(x_ref, mask_ref, w1_ref, g1_ref, beta1_ref, w2_ref, g2_ref, beta2_ref,
                  o_ref, *, shifts, inv_count, is_res, same_channels):
    """Whole ResidualConvBlock on a (C, M) slab resident in VMEM (M on lanes)."""
    mask = mask_ref[...]                      # (1, Mt): 1.0 on valid interior pixels
    x = x_ref[...]                            # (C1p, Mt)

    def conv3x3(inp, w_ref):
        # In-kernel im2col: 9 lane-rolled views of the padded grid, stacked along
        # sublanes, contracted in a single MXU matmul.  Wrap-around of the roll only
        # lands on padding-ring / tail columns, which are masked out downstream.
        taps = [inp if s == 0 else pltpu.roll(inp, s, axis=1) for s in shifts]
        patches = jnp.concatenate(taps, axis=0)                      # (9*C, Mt)
        return jnp.dot(w_ref[...], patches, preferred_element_type=jnp.float32)

    def bn_gelu(acc, g_ref, beta_ref):
        # Train-mode BatchNorm over the valid pixels: one masked reduction pass
        # (sum + sum of squares), biased variance, eps=1e-5.  Conv bias is omitted
        # because it cancels exactly under the mean subtraction.
        a = acc * mask                                               # zero invalid cols
        s1 = jnp.sum(a, axis=1, keepdims=True)                       # (C, 1)
        s2 = jnp.sum(a * a, axis=1, keepdims=True)                   # (C, 1)
        mean = s1 * inv_count
        var = jnp.maximum(s2 * inv_count - mean * mean, 0.0)         # guard cancellation
        xn = (acc - mean) * lax.rsqrt(var + _BN_EPS) * g_ref[...] + beta_ref[...]
        return _gelu_exact(xn)

    h1 = bn_gelu(conv3x3(x, w1_ref), g1_ref, beta1_ref)
    x1 = h1 * mask                  # conv2 needs exact zeros on the padding ring / tail
    h2 = bn_gelu(conv3x3(x1, w2_ref), g2_ref, beta2_ref)

    if is_res:
        base = x if same_channels else x1
        o_ref[...] = (base + h2) * _INV_1414
    else:
        o_ref[...] = h2


def _fused_call(xt, mask, w1, g1, beta1, w2, g2, beta2, *, shifts, inv_count,
                is_res, same_channels):
    C2p = w1.shape[0]
    Mt = xt.shape[1]
    vmem = pl.BlockSpec(memory_space=pltpu.MemorySpace.VMEM)
    return pl.pallas_call(
        partial(_fused_kernel, shifts=shifts, inv_count=inv_count,
                is_res=is_res, same_channels=same_channels),
        out_shape=jax.ShapeDtypeStruct((C2p, Mt), jnp.float32),
        in_specs=[vmem] * 8,
        out_specs=vmem,
        # Explicit VMEM budget (v5e default scoped limit is only 16 MiB).
        compiler_params=pltpu.CompilerParams(vmem_limit_bytes=32 * 1024 * 1024),
    )(xt, mask, w1, g1, beta1, w2, g2, beta2)


@partial(jax.jit, static_argnames=("is_res",))
def residual_conv_block(x_nchw, params, *, is_res):
    """Forward pass of ResidualConvBlock. Input/output are NCHW like PyTorch."""
    N, Cin, H, W = x_nchw.shape
    Cout = params["w1"].shape[-1]
    same_channels = Cin == Cout
    Hp, Wp = H + 2, W + 2
    C1p = _round_up(Cin, 8)
    C2p = _round_up(Cout, 8)
    Mp = N * Hp * Wp
    Mt = _round_up(Mp, 128)

    # ---- glue: NCHW -> channel-major (C, M) slab with zero spatial / tail padding ----
    xt = jnp.transpose(x_nchw.astype(jnp.float32), (1, 0, 2, 3))      # (Cin, N, H, W)
    xt = jnp.pad(xt, ((0, C1p - Cin), (0, 0), (1, 1), (1, 1)))        # (C1p, N, Hp, Wp)
    xt = jnp.pad(xt.reshape(C1p, Mp), ((0, 0), (0, Mt - Mp)))         # (C1p, Mt)

    # Validity mask: 1.0 on interior (real) output pixels, 0.0 on padding ring / tail.
    hh = jnp.arange(Hp)
    ww = jnp.arange(Wp)
    m2d = ((hh >= 1) & (hh <= H))[:, None] & ((ww >= 1) & (ww <= W))[None, :]
    mask = jnp.broadcast_to(m2d[None], (N, Hp, Wp)).reshape(1, Mp).astype(jnp.float32)
    mask = jnp.pad(mask, ((0, 0), (0, Mt - Mp)))                      # (1, Mt)

    def prep_w(w_hwio, cinp, coutp):
        # (3,3,ci,co) HWIO -> (coutp, 9*cinp); K index = tap*cinp + ci, matching the
        # in-kernel concatenation order of the 9 rolled views.
        ci, co = w_hwio.shape[2], w_hwio.shape[3]
        wt = jnp.transpose(w_hwio, (3, 0, 1, 2))                      # (co, kh, kw, ci)
        wt = jnp.pad(wt, ((0, coutp - co), (0, 0), (0, 0), (0, cinp - ci)))
        return wt.reshape(coutp, 9 * cinp)

    def prep_v(v, coutp):
        v = v.reshape(-1)
        return jnp.pad(v, (0, coutp - v.shape[0])).reshape(coutp, 1)

    w1 = prep_w(params["w1"], C1p, C2p)
    w2 = prep_w(params["w2"], C2p, C2p)
    g1, beta1 = prep_v(params["g1"], C2p), prep_v(params["beta1"], C2p)
    g2, beta2 = prep_v(params["g2"], C2p), prep_v(params["beta2"], C2p)
    # NOTE: params["b1"] / params["b2"] (conv biases) are intentionally NOT passed:
    # train-mode BatchNorm subtracts the batch mean, so they cancel exactly.

    # Lane-roll amounts for the 9 taps of a 3x3 / pad=1 conv on the flattened grid:
    # tap (kh,kw) reads flat position p + (kh-1)*Wp + (kw-1)  =>  roll by (-d) mod Mt.
    shifts = tuple(int((-((kh - 1) * Wp + (kw - 1))) % Mt)
                   for kh in range(3) for kw in range(3))
    inv_count = 1.0 / float(N * H * W)

    out = _fused_call(xt, mask, w1, g1, beta1, w2, g2, beta2,
                      shifts=shifts, inv_count=inv_count,
                      is_res=is_res, same_channels=same_channels)

    # ---- glue: (C2p, Mt) slab -> NCHW, dropping channel / spatial padding ----
    out = out[:Cout, :Mp].reshape(Cout, N, Hp, Wp)[:, :, 1:Hp - 1, 1:Wp - 1]
    return jnp.transpose(out, (1, 0, 2, 3))


def init_params(key, cin, cout):
    # Deterministic synthetic parameters (shapes follow nn.Conv2d / nn.BatchNorm2d).
    k1, k2, k3, k4 = jax.random.split(key, 4)
    lim1 = 1.0 / math.sqrt(cin * 9)
    lim2 = 1.0 / math.sqrt(cout * 9)
    return {
        "w1": jax.random.uniform(k1, (3, 3, cin, cout), jnp.float32, -lim1, lim1),  # HWIO
        "b1": jax.random.uniform(k2, (1, cout), jnp.float32, -lim1, lim1),
        "g1": jnp.ones((1, cout), jnp.float32),
        "beta1": jnp.zeros((1, cout), jnp.float32),
        "w2": jax.random.uniform(k3, (3, 3, cout, cout), jnp.float32, -lim2, lim2),
        "b2": jax.random.uniform(k4, (1, cout), jnp.float32, -lim2, lim2),
        "g2": jnp.ones((1, cout), jnp.float32),
        "beta2": jnp.zeros((1, cout), jnp.float32),
    }


def reference_forward(x_nchw, params, *, is_res):
    # Pure-JAX reference with identical semantics (for validation only).
    # Note: conv biases ARE applied here, demonstrating that they cancel under BN.
    def conv_bn_gelu(x, w, b, g, beta):
        y = lax.conv_general_dilated(x, w, (1, 1), ((1, 1), (1, 1)),
                                     dimension_numbers=("NHWC", "HWIO", "NHWC"))
        y = y + b.reshape(1, 1, 1, -1)
        mean = jnp.mean(y, axis=(0, 1, 2), keepdims=True)
        var = jnp.mean((y - mean) ** 2, axis=(0, 1, 2), keepdims=True)
        y = (y - mean) * lax.rsqrt(var + _BN_EPS) * g.reshape(1, 1, 1, -1) + beta.reshape(1, 1, 1, -1)
        return jax.nn.gelu(y, approximate=False)

    N, Cin, H, W = x_nchw.shape
    Cout = params["w1"].shape[-1]
    x = jnp.transpose(x_nchw, (0, 2, 3, 1)).astype(jnp.float32)
    x1 = conv_bn_gelu(x, params["w1"], params["b1"], params["g1"], params["beta1"])
    x2 = conv_bn_gelu(x1, params["w2"], params["b2"], params["g2"], params["beta2"])
    if is_res:
        out = (x + x2) / 1.414 if Cin == Cout else (x1 + x2) / 1.414
    else:
        out = x2
    return jnp.transpose(out, (0, 3, 1, 2))


if __name__ == "__main__":
    key = jax.random.PRNGKey(0)
    kx, kp1, kp2 = jax.random.split(key, 3)
    x = jax.random.normal(kx, (2, 4, 16, 16), jnp.float32)  # NCHW, like PyTorch

    # Case 1: residual block, matching channels (4 -> 4), is_res=True.
    params_a = init_params(kp1, 4, 4)
    out_a = jax.block_until_ready(residual_conv_block(x, params_a, is_res=True))
    ref_a = reference_forward(x, params_a, is_res=True)
    assert out_a.shape == (2, 4, 16, 16)
    assert float(jnp.max(jnp.abs(out_a - ref_a))) < 2e-4

    # Case 2: plain block, channel expansion (4 -> 8), is_res=False.
    params_b = init_params(kp2, 4, 8)
    out_b = jax.block_until_ready(residual_conv_block(x, params_b, is_res=False))
    ref_b = reference_forward(x, params_b, is_res=False)
    assert out_b.shape == (2, 8, 16, 16)
    assert float(jnp.max(jnp.abs(out_b - ref_b))) < 2e-4

    print("KERNEL_OK")
</pallas_src>

<mosaic_0001>
module attributes {stable_mosaic.version = 11 : i64} {
  func.func @_fused_kernel(%arg0: memref<8x768xf32, #tpu.memory_space<vmem>>, %arg1: memref<1x768xf32, #tpu.memory_space<vmem>>, %arg2: memref<8x72xf32, #tpu.memory_space<vmem>>, %arg3: memref<8x1xf32, #tpu.memory_space<vmem>>, %arg4: memref<8x1xf32, #tpu.memory_space<vmem>>, %arg5: memref<8x72xf32, #tpu.memory_space<vmem>>, %arg6: memref<8x1xf32, #tpu.memory_space<vmem>>, %arg7: memref<8x1xf32, #tpu.memory_space<vmem>>, %arg8: memref<8x768xf32, #tpu.memory_space<vmem>>) attributes {dimension_semantics = [], scalar_prefetch = 0 : i64, scratch_operands = 0 : i64, tpu.core_type = #tpu.core_type<tc>} {
    %c0 = arith.constant 0 : index
    %c0_0 = arith.constant 0 : index
    %0 = vector.load %arg1[%c0, %c0_0] : memref<1x768xf32, #tpu.memory_space<vmem>>, vector<1x768xf32>
    %c0_1 = arith.constant 0 : index
    %c0_2 = arith.constant 0 : index
    %1 = vector.load %arg0[%c0_1, %c0_2] : memref<8x768xf32, #tpu.memory_space<vmem>>, vector<8x768xf32>
    %c19_i32 = arith.constant 19 : i32
    %2 = tpu.dynamic_rotate %1 by %c19_i32 dim 1 : vector<8x768xf32>, i32 -> vector<8x768xf32>
    %c18_i32 = arith.constant 18 : i32
    %3 = tpu.dynamic_rotate %1 by %c18_i32 dim 1 : vector<8x768xf32>, i32 -> vector<8x768xf32>
    %c17_i32 = arith.constant 17 : i32
    %4 = tpu.dynamic_rotate %1 by %c17_i32 dim 1 : vector<8x768xf32>, i32 -> vector<8x768xf32>
    %c1_i32 = arith.constant 1 : i32
    %5 = tpu.dynamic_rotate %1 by %c1_i32 dim 1 : vector<8x768xf32>, i32 -> vector<8x768xf32>
    %c767_i32 = arith.constant 767 : i32
    %6 = tpu.dynamic_rotate %1 by %c767_i32 dim 1 : vector<8x768xf32>, i32 -> vector<8x768xf32>
    %c751_i32 = arith.constant 751 : i32
    %7 = tpu.dynamic_rotate %1 by %c751_i32 dim 1 : vector<8x768xf32>, i32 -> vector<8x768xf32>
    %c750_i32 = arith.constant 750 : i32
    %8 = tpu.dynamic_rotate %1 by %c750_i32 dim 1 : vector<8x768xf32>, i32 -> vector<8x768xf32>
    %c749_i32 = arith.constant 749 : i32
    %9 = tpu.dynamic_rotate %1 by %c749_i32 dim 1 : vector<8x768xf32>, i32 -> vector<8x768xf32>
    %10 = tpu.concatenate %2, %3, %4, %5, %1, %6, %7, %8, %9 in 0 : vector<8x768xf32>, vector<8x768xf32>, vector<8x768xf32>, vector<8x768xf32>, vector<8x768xf32>, vector<8x768xf32>, vector<8x768xf32>, vector<8x768xf32>, vector<8x768xf32> -> vector<72x768xf32>
    %c0_3 = arith.constant 0 : index
    %c0_4 = arith.constant 0 : index
    %11 = vector.load %arg2[%c0_3, %c0_4] : memref<8x72xf32, #tpu.memory_space<vmem>>, vector<8x72xf32>
    %cst = arith.constant dense<0.000000e+00> : vector<8x768xf32>
    %12 = tpu.matmul %11, %10, %cst {dimension_numbers = #tpu.dot_dimension_numbers<[1], [0], [0], [1], [0, 0, 1, 1], [], []>} : vector<8x72xf32>, vector<72x768xf32>, vector<8x768xf32> -> vector<8x768xf32>
    %13 = vector.broadcast %0 : vector<1x768xf32> to vector<8x768xf32>
    %14 = arith.mulf %12, %13 : vector<8x768xf32>
    %cst_5 = arith.constant dense<0.000000e+00> : vector<8xf32>
    %15 = vector.multi_reduction <add>, %14, %cst_5 [1] : vector<8x768xf32> to vector<8xf32>
    %16 = vector.shape_cast %15 : vector<8xf32> to vector<8x1xf32>
    %17 = arith.mulf %14, %14 : vector<8x768xf32>
    %cst_6 = arith.constant dense<0.000000e+00> : vector<8xf32>
    %18 = vector.multi_reduction <add>, %17, %cst_6 [1] : vector<8x768xf32> to vector<8xf32>
    %19 = vector.shape_cast %18 : vector<8xf32> to vector<8x1xf32>
    %cst_7 = arith.constant 0.001953125 : f32
    %20 = vector.broadcast %cst_7 : f32 to vector<8x1xf32>
    %21 = arith.mulf %16, %20 : vector<8x1xf32>
    %cst_8 = arith.constant 0.001953125 : f32
    %22 = vector.broadcast %cst_8 : f32 to vector<8x1xf32>
    %23 = arith.mulf %19, %22 : vector<8x1xf32>
    %24 = arith.mulf %21, %21 : vector<8x1xf32>
    %25 = arith.subf %23, %24 : vector<8x1xf32>
    %cst_9 = arith.constant 0.000000e+00 : f32
    %26 = vector.broadcast %cst_9 : f32 to vector<8x1xf32>
    %27 = arith.maximumf %25, %26 : vector<8x1xf32>
    %28 = vector.broadcast %21 : vector<8x1xf32> to vector<8x768xf32>
    %29 = arith.subf %12, %28 : vector<8x768xf32>
    %cst_10 = arith.constant 9.99999974E-6 : f32
    %30 = vector.broadcast %cst_10 : f32 to vector<8x1xf32>
    %31 = arith.addf %27, %30 : vector<8x1xf32>
    %32 = math.rsqrt %31 : vector<8x1xf32>
    %33 = vector.broadcast %32 : vector<8x1xf32> to vector<8x768xf32>
    %34 = arith.mulf %29, %33 : vector<8x768xf32>
    %c0_11 = arith.constant 0 : index
    %c0_12 = arith.constant 0 : index
    %35 = vector.load %arg3[%c0_11, %c0_12] : memref<8x1xf32, #tpu.memory_space<vmem>>, vector<8x1xf32>
    %36 = vector.broadcast %35 : vector<8x1xf32> to vector<8x768xf32>
    %37 = arith.mulf %34, %36 : vector<8x768xf32>
    %c0_13 = arith.constant 0 : index
    %c0_14 = arith.constant 0 : index
    %38 = vector.load %arg4[%c0_13, %c0_14] : memref<8x1xf32, #tpu.memory_space<vmem>>, vector<8x1xf32>
    %39 = vector.broadcast %38 : vector<8x1xf32> to vector<8x768xf32>
    %40 = arith.addf %37, %39 : vector<8x768xf32>
    %cst_15 = arith.constant 5.000000e-01 : f32
    %41 = vector.broadcast %cst_15 : f32 to vector<8x768xf32>
    %42 = arith.mulf %41, %40 : vector<8x768xf32>
    %cst_16 = arith.constant 0.707106769 : f32
    %43 = vector.broadcast %cst_16 : f32 to vector<8x768xf32>
    %44 = arith.mulf %40, %43 : vector<8x768xf32>
    %45 = math.absf %44 : vector<8x768xf32>
    %cst_17 = arith.constant 0.327591091 : f32
    %46 = vector.broadcast %cst_17 : f32 to vector<8x768xf32>
    %47 = arith.mulf %46, %45 : vector<8x768xf32>
    %cst_18 = arith.constant 1.000000e+00 : f32
    %48 = vector.broadcast %cst_18 : f32 to vector<8x768xf32>
    %49 = arith.addf %48, %47 : vector<8x768xf32>
    %cst_19 = arith.constant 1.000000e+00 : f32
    %50 = vector.broadcast %cst_19 : f32 to vector<8x768xf32>
    %51 = arith.divf %50, %49 : vector<8x768xf32>
    %cst_20 = arith.constant 1.06140542 : f32
    %52 = vector.broadcast %cst_20 : f32 to vector<8x768xf32>
    %53 = arith.mulf %52, %51 : vector<8x768xf32>
    %cst_21 = arith.constant -1.45315206 : f32
    %54 = vector.broadcast %cst_21 : f32 to vector<8x768xf32>
    %55 = arith.addf %53, %54 : vector<8x768xf32>
    %56 = arith.mulf %55, %51 : vector<8x768xf32>
    %cst_22 = arith.constant 1.42141378 : f32
    %57 = vector.broadcast %cst_22 : f32 to vector<8x768xf32>
    %58 = arith.addf %56, %57 : vector<8x768xf32>
    %59 = arith.mulf %58, %51 : vector<8x768xf32>
    %cst_23 = arith.constant -0.284496725 : f32
    %60 = vector.broadcast %cst_23 : f32 to vector<8x768xf32>
    %61 = arith.addf %59, %60 : vector<8x768xf32>
    %62 = arith.mulf %61, %51 : vector<8x768xf32>
    %cst_24 = arith.constant 0.254829586 : f32
    %63 = vector.broadcast %cst_24 : f32 to vector<8x768xf32>
    %64 = arith.addf %62, %63 : vector<8x768xf32>
    %65 = arith.mulf %64, %51 : vector<8x768xf32>
    %cst_25 = arith.constant 0.000000e+00 : f32
    %66 = vector.broadcast %cst_25 : f32 to vector<8x768xf32>
    %67 = arith.subf %66, %45 : vector<8x768xf32>
    %68 = arith.mulf %67, %45 : vector<8x768xf32>
    %69 = math.exp %68 : vector<8x768xf32>
    %70 = arith.mulf %65, %69 : vector<8x768xf32>
    %cst_26 = arith.constant 1.000000e+00 : f32
    %71 = vector.broadcast %cst_26 : f32 to vector<8x768xf32>
    %72 = arith.subf %71, %70 : vector<8x768xf32>
    %cst_27 = arith.constant 0.000000e+00 : f32
    %73 = vector.broadcast %cst_27 : f32 to vector<8x768xf32>
    %74 = arith.cmpf oge, %44, %73 : vector<8x768xf32>
    %cst_28 = arith.constant 0.000000e+00 : f32
    %75 = vector.broadcast %cst_28 : f32 to vector<8x768xf32>
    %76 = arith.subf %75, %72 : vector<8x768xf32>
    %77 = arith.select %74, %72, %76 : vector<8x768xi1>, vector<8x768xf32>
    %cst_29 = arith.constant 1.000000e+00 : f32
    %78 = vector.broadcast %cst_29 : f32 to vector<8x768xf32>
    %79 = arith.addf %78, %77 : vector<8x768xf32>
    %80 = arith.mulf %42, %79 : vector<8x768xf32>
    %81 = vector.broadcast %0 : vector<1x768xf32> to vector<8x768xf32>
    %82 = arith.mulf %80, %81 : vector<8x768xf32>
    %c19_i32_30 = arith.constant 19 : i32
    %83 = tpu.dynamic_rotate %82 by %c19_i32_30 dim 1 : vector<8x768xf32>, i32 -> vector<8x768xf32>
    %c18_i32_31 = arith.constant 18 : i32
    %84 = tpu.dynamic_rotate %82 by %c18_i32_31 dim 1 : vector<8x768xf32>, i32 -> vector<8x768xf32>
    %c17_i32_32 = arith.constant 17 : i32
    %85 = tpu.dynamic_rotate %82 by %c17_i32_32 dim 1 : vector<8x768xf32>, i32 -> vector<8x768xf32>
    %c1_i32_33 = arith.constant 1 : i32
    %86 = tpu.dynamic_rotate %82 by %c1_i32_33 dim 1 : vector<8x768xf32>, i32 -> vector<8x768xf32>
    %c767_i32_34 = arith.constant 767 : i32
    %87 = tpu.dynamic_rotate %82 by %c767_i32_34 dim 1 : vector<8x768xf32>, i32 -> vector<8x768xf32>
    %c751_i32_35 = arith.constant 751 : i32
    %88 = tpu.dynamic_rotate %82 by %c751_i32_35 dim 1 : vector<8x768xf32>, i32 -> vector<8x768xf32>
    %c750_i32_36 = arith.constant 750 : i32
    %89 = tpu.dynamic_rotate %82 by %c750_i32_36 dim 1 : vector<8x768xf32>, i32 -> vector<8x768xf32>
    %c749_i32_37 = arith.constant 749 : i32
    %90 = tpu.dynamic_rotate %82 by %c749_i32_37 dim 1 : vector<8x768xf32>, i32 -> vector<8x768xf32>
    %91 = tpu.concatenate %83, %84, %85, %86, %82, %87, %88, %89, %90 in 0 : vector<8x768xf32>, vector<8x768xf32>, vector<8x768xf32>, vector<8x768xf32>, vector<8x768xf32>, vector<8x768xf32>, vector<8x768xf32>, vector<8x768xf32>, vector<8x768xf32> -> vector<72x768xf32>
    %c0_38 = arith.constant 0 : index
    %c0_39 = arith.constant 0 : index
    %92 = vector.load %arg5[%c0_38, %c0_39] : memref<8x72xf32, #tpu.memory_space<vmem>>, vector<8x72xf32>
    %cst_40 = arith.constant dense<0.000000e+00> : vector<8x768xf32>
    %93 = tpu.matmul %92, %91, %cst_40 {dimension_numbers = #tpu.dot_dimension_numbers<[1], [0], [0], [1], [0, 0, 1, 1], [], []>} : vector<8x72xf32>, vector<72x768xf32>, vector<8x768xf32> -> vector<8x768xf32>
    %94 = vector.broadcast %0 : vector<1x768xf32> to vector<8x768xf32>
    %95 = arith.mulf %93, %94 : vector<8x768xf32>
    %cst_41 = arith.constant dense<0.000000e+00> : vector<8xf32>
    %96 = vector.multi_reduction <add>, %95, %cst_41 [1] : vector<8x768xf32> to vector<8xf32>
    %97 = vector.shape_cast %96 : vector<8xf32> to vector<8x1xf32>
    %98 = arith.mulf %95, %95 : vector<8x768xf32>
    %cst_42 = arith.constant dense<0.000000e+00> : vector<8xf32>
    %99 = vector.multi_reduction <add>, %98, %cst_42 [1] : vector<8x768xf32> to vector<8xf32>
    %100 = vector.shape_cast %99 : vector<8xf32> to vector<8x1xf32>
    %cst_43 = arith.constant 0.001953125 : f32
    %101 = vector.broadcast %cst_43 : f32 to vector<8x1xf32>
    %102 = arith.mulf %97, %101 : vector<8x1xf32>
    %cst_44 = arith.constant 0.001953125 : f32
    %103 = vector.broadcast %cst_44 : f32 to vector<8x1xf32>
    %104 = arith.mulf %100, %103 : vector<8x1xf32>
    %105 = arith.mulf %102, %102 : vector<8x1xf32>
    %106 = arith.subf %104, %105 : vector<8x1xf32>
    %cst_45 = arith.constant 0.000000e+00 : f32
    %107 = vector.broadcast %cst_45 : f32 to vector<8x1xf32>
    %108 = arith.maximumf %106, %107 : vector<8x1xf32>
    %109 = vector.broadcast %102 : vector<8x1xf32> to vector<8x768xf32>
    %110 = arith.subf %93, %109 : vector<8x768xf32>
    %cst_46 = arith.constant 9.99999974E-6 : f32
    %111 = vector.broadcast %cst_46 : f32 to vector<8x1xf32>
    %112 = arith.addf %108, %111 : vector<8x1xf32>
    %113 = math.rsqrt %112 : vector<8x1xf32>
    %114 = vector.broadcast %113 : vector<8x1xf32> to vector<8x768xf32>
    %115 = arith.mulf %110, %114 : vector<8x768xf32>
    %c0_47 = arith.constant 0 : index
    %c0_48 = arith.constant 0 : index
    %116 = vector.load %arg6[%c0_47, %c0_48] : memref<8x1xf32, #tpu.memory_space<vmem>>, vector<8x1xf32>
    %117 = vector.broadcast %116 : vector<8x1xf32> to vector<8x768xf32>
    %118 = arith.mulf %115, %117 : vector<8x768xf32>
    %c0_49 = arith.constant 0 : index
    %c0_50 = arith.constant 0 : index
    %119 = vector.load %arg7[%c0_49, %c0_50] : memref<8x1xf32, #tpu.memory_space<vmem>>, vector<8x1xf32>
    %120 = vector.broadcast %119 : vector<8x1xf32> to vector<8x768xf32>
    %121 = arith.addf %118, %120 : vector<8x768xf32>
    %cst_51 = arith.constant 5.000000e-01 : f32
    %122 = vector.broadcast %cst_51 : f32 to vector<8x768xf32>
    %123 = arith.mulf %122, %121 : vector<8x768xf32>
    %cst_52 = arith.constant 0.707106769 : f32
    %124 = vector.broadcast %cst_52 : f32 to vector<8x768xf32>
    %125 = arith.mulf %121, %124 : vector<8x768xf32>
    %126 = math.absf %125 : vector<8x768xf32>
    %cst_53 = arith.constant 0.327591091 : f32
    %127 = vector.broadcast %cst_53 : f32 to vector<8x768xf32>
    %128 = arith.mulf %127, %126 : vector<8x768xf32>
    %cst_54 = arith.constant 1.000000e+00 : f32
    %129 = vector.broadcast %cst_54 : f32 to vector<8x768xf32>
    %130 = arith.addf %129, %128 : vector<8x768xf32>
    %cst_55 = arith.constant 1.000000e+00 : f32
    %131 = vector.broadcast %cst_55 : f32 to vector<8x768xf32>
    %132 = arith.divf %131, %130 : vector<8x768xf32>
    %cst_56 = arith.constant 1.06140542 : f32
    %133 = vector.broadcast %cst_56 : f32 to vector<8x768xf32>
    %134 = arith.mulf %133, %132 : vector<8x768xf32>
    %cst_57 = arith.constant -1.45315206 : f32
    %135 = vector.broadcast %cst_57 : f32 to vector<8x768xf32>
    %136 = arith.addf %134, %135 : vector<8x768xf32>
    %137 = arith.mulf %136, %132 : vector<8x768xf32>
    %cst_58 = arith.constant 1.42141378 : f32
    %138 = vector.broadcast %cst_58 : f32 to vector<8x768xf32>
    %139 = arith.addf %137, %138 : vector<8x768xf32>
    %140 = arith.mulf %139, %132 : vector<8x768xf32>
    %cst_59 = arith.constant -0.284496725 : f32
    %141 = vector.broadcast %cst_59 : f32 to vector<8x768xf32>
    %142 = arith.addf %140, %141 : vector<8x768xf32>
    %143 = arith.mulf %142, %132 : vector<8x768xf32>
    %cst_60 = arith.constant 0.254829586 : f32
    %144 = vector.broadcast %cst_60 : f32 to vector<8x768xf32>
    %145 = arith.addf %143, %144 : vector<8x768xf32>
    %146 = arith.mulf %145, %132 : vector<8x768xf32>
    %cst_61 = arith.constant 0.000000e+00 : f32
    %147 = vector.broadcast %cst_61 : f32 to vector<8x768xf32>
    %148 = arith.subf %147, %126 : vector<8x768xf32>
    %149 = arith.mulf %148, %126 : vector<8x768xf32>
    %150 = math.exp %149 : vector<8x768xf32>
    %151 = arith.mulf %146, %150 : vector<8x768xf32>
    %cst_62 = arith.constant 1.000000e+00 : f32
    %152 = vector.broadcast %cst_62 : f32 to vector<8x768xf32>
    %153 = arith.subf %152, %151 : vector<8x768xf32>
    %cst_63 = arith.constant 0.000000e+00 : f32
    %154 = vector.broadcast %cst_63 : f32 to vector<8x768xf32>
    %155 = arith.cmpf oge, %125, %154 : vector<8x768xf32>
    %cst_64 = arith.constant 0.000000e+00 : f32
    %156 = vector.broadcast %cst_64 : f32 to vector<8x768xf32>
    %157 = arith.subf %156, %153 : vector<8x768xf32>
    %158 = arith.select %155, %153, %157 : vector<8x768xi1>, vector<8x768xf32>
    %cst_65 = arith.constant 1.000000e+00 : f32
    %159 = vector.broadcast %cst_65 : f32 to vector<8x768xf32>
    %160 = arith.addf %159, %158 : vector<8x768xf32>
    %161 = arith.mulf %123, %160 : vector<8x768xf32>
    %162 = arith.addf %1, %161 : vector<8x768xf32>
    %cst_66 = arith.constant 0.70721358 : f32
    %163 = vector.broadcast %cst_66 : f32 to vector<8x768xf32>
    %164 = arith.mulf %162, %163 : vector<8x768xf32>
    %c0_67 = arith.constant 0 : index
    %c0_68 = arith.constant 0 : index
    %165 = vector.load %arg8[%c0_67, %c0_68] : memref<8x768xf32, #tpu.memory_space<vmem>>, vector<8x768xf32>
    tpu.vector_store %arg8[%c0_67, %c0_68], %164 {strides = array<i32>} : memref<8x768xf32, #tpu.memory_space<vmem>>, vector<8x768xf32>,
    return
  }
}

</mosaic_0001>

<bundles_post_ra>
// kernel: residual_conv_block.1
= control target key start
LH: loop header
LB: loop body
LE: loop exit
PB: predicated region body
PF: predicated region fallthrough
CT: control target
= control target key end

     0   :  { %s1642_s13 = smov 19   ;;  %s1643_s14 = smov 18   ;;  %v1649_v10 = vmov 0.0   ;;  %v48_v11 = vlaneseq  ;;  %vm191_vm8 = vcmask 588800   ;;  %s2560_s0 = inlined_call_operand.vmem [shape: f32[8,768], index: 0, kind: input, shape index: {}]   ;;  %s2561_s2 = inlined_call_operand.vmem [shape: f32[8,72], index: 2, kind: input, shape index: {}]   ;;  %s2562_s1 = inlined_call_operand.vmem [shape: f32[1,768], index: 1, kind: input, shape index: {}]   ;;  %s2563_s4 = inlined_call_operand.vmem [shape: f32[8,1], index: 4, kind: input, shape index: {}]   ;;  %s2564_s3 = inlined_call_operand.vmem [shape: f32[8,1], index: 3, kind: input, shape index: {}]   ;;  %s2565_s5 = inlined_call_operand.vmem [shape: f32[8,72], index: 5, kind: input, shape index: {}]   ;;  %s2566_s7 = inlined_call_operand.vmem [shape: f32[8,1], index: 7, kind: input, shape index: {}]   ;;  %s2567_s6 = inlined_call_operand.vmem [shape: f32[8,1], index: 6, kind: input, shape index: {}]   ;;  %s2568_s8 = inlined_call_operand.vmem [shape: f32[8,768], index: 8, kind: output, shape index: {}]  }
   0x1   :  { %v1700_v0 = vld [vmem:[%s2560_s0 + $0x10] sm:$0xff]  ;;  %v1705_v1 = vld [vmem:[%s2560_s0 + $0x28] sm:$0xff]  ;;  %v1710_v2 = vld [vmem:[%s2560_s0] sm:$0xff]  ;;  %s1644_s15 = smov 1   ;;  %s1645_s16 = smov 17   ;;  %259 = vmatprep.mubr.f32.mxu0 %v1649_v10  ;;  %330 = vmatprep.mubr.f32.mxu1 %v1649_v10 }
   0x2   :  { %v1412_v3 = vpack.i.bf16 %v1700_v0, %v1705_v1  ;;  %v1717_v4 = vld [vmem:[%s2560_s0 + $0x8] sm:$0xff]  ;;  %s1646_s17 = smov 127   ;;  %s1647_s18 = smov 110   ;;  %v1739_v7 = vld [vmem:[%s2560_s0 + $0x18] sm:$0xff]  ;;  %v1744_v8 = vld [vmem:[%s2560_s0 + $0x20] sm:$0xff]  ;;  %v1784_v14 = vand.u32 127, %v48_v11 }
   0x3   :  { %v1402_v5 = vpack.i.bf16 %v1717_v4, %v1710_v2  ;;  %v1442_v6 = vpack.i.bf16 %v1700_v0, %v1717_v4  ;;  %s1648_s19 = smov 111   ;;  %v1462_v9 = vpack.i.bf16 %v1744_v8, %v1739_v7  ;;  %s1650_s24 = smov 109  }
   0x4   :  { %1413 = vrot.lane.b32.xlu1 %v1412_v3, %s1642_s13  ;;  %vm50_vm0 = vcmp.lt.s32.totalorder %v1784_v14, 19  ;;  %vm69_vm1 = vcmp.lt.s32.totalorder %v1784_v14, 18  ;;  %vm88_vm2 = vcmp.lt.s32.totalorder %v1784_v14, 17  ;;  %vm107_vm3 = vcmp.lt.s32.totalorder %v1784_v14, 1 }
   0x5   :  { %1403 = vrot.lane.b32.xlu0 %v1402_v5, %s1642_s13  ;;  %vm126_vm4 = vcmp.lt.s32.totalorder %v1784_v14, 127  ;;  %vm164_vm5 = vcmp.lt.s32.totalorder %v1784_v14, 110  ;;  %vm145_vm6 = vcmp.lt.s32.totalorder %v1784_v14, 111  ;;  %vm183_vm7 = vcmp.lt.s32.totalorder %v1784_v14, 109 }
   0x8   :  { %1418 = vrot.lane.b32.xlu1 %v1412_v3, %s1643_s14 }
   0x9   :  { %1408 = vrot.lane.b32.xlu0 %v1402_v5, %s1643_s14 }
   0xc   :  { %1428 = vrot.lane.b32.xlu1 %v1402_v5, %s1644_s15 }
   0xd   :  { %1423 = vrot.lane.b32.xlu0 %v1402_v5, %s1645_s16 }
  0x10   :  { %1438 = vrot.lane.b32.xlu1 %v1412_v3, %s1644_s15 }
  0x11   :  { %1433 = vrot.lane.b32.xlu0 %v1412_v3, %s1645_s16 }
  0x14   :  { %114 = vrot.lane.b32.xlu1 %v1710_v2, %s1646_s17 }
  0x15   :  { %1443 = vrot.lane.b32.xlu0 %v1442_v6, %s1646_s17 }
  0x18   :  { %1453 = vrot.lane.b32.xlu1 %v1442_v6, %s1647_s18 }
  0x19   :  { %1448 = vrot.lane.b32.xlu0 %v1442_v6, %s1648_s19 }
  0x1c   :  { %152 = vrot.lane.b32.xlu1 %v1710_v2, %s1647_s18 }
  0x1d   :  { %133 = vrot.lane.b32.xlu0 %v1710_v2, %s1648_s19 }
  0x20   :  { %1463 = vrot.lane.b32.xlu1 %v1462_v9, %s1643_s14 }
  0x21   :  { %1458 = vrot.lane.b32.xlu0 %v1462_v9, %s1642_s13 }
  0x24   :  { %1473 = vrot.lane.b32.xlu1 %v1462_v9, %s1644_s15 }
  0x25   :  { %1468 = vrot.lane.b32.xlu0 %v1462_v9, %s1645_s16 }
  0x28   :  { %175 = vrot.lane.b32.xlu1 %v1700_v0, %s1650_s24 }
  0x29   :  { %173 = vrot.lane.b32.xlu0 %v1717_v4, %s1650_s24 }
  0x2c   :  { %1478 = vrot.lane.b32.xlu1 %v1462_v9, %s1646_s17 }
  0x2d   :  { %171 = vrot.lane.b32.xlu0 %v1710_v2, %s1650_s24 }
  0x30   :  { %1483 = vrot.lane.b32.xlu1 %v1462_v9, %s1648_s19 }
  0x31   :  { %124 = vrot.lane.b32.xlu0 %v1705_v1, %s1646_s17 }
  0x34   :  { %143 = vrot.lane.b32.xlu1 %v1705_v1, %s1648_s19 }
  0x35   :  { %1488 = vrot.lane.b32.xlu0 %v1462_v9, %s1647_s18 }
  0x38   :  { %177 = vrot.lane.b32.xlu1 %v1739_v7, %s1650_s24 }
  0x39   :  { %162 = vrot.lane.b32.xlu0 %v1705_v1, %s1647_s18 }
  0x3c   :  { %181 = vrot.lane.b32.xlu1 %v1705_v1, %s1650_s24 }
  0x3d   :  { %179 = vrot.lane.b32.xlu0 %v1744_v8, %s1650_s24 }
  0x76   :  { %v1779_v12 = vpop.permute.xlu1 %1413 }
  0x77   :  { %v1781_v13 = vpop.permute.xlu0 %1403  ;;  %v1415_v15 = vunpack.i.l.bf16 %v1779_v12  ;;  %v1416_v9 = vunpack.i.h.bf16 %v1779_v12 }
  0x78   :  { %v1406_v16 = vunpack.i.h.bf16 %v1781_v13  ;;  %v1405_v17 = vunpack.i.l.bf16 %v1781_v13 }
  0x7a   :  { %v1789_v18 = vpop.permute.xlu1 %1418  ;;  %v55_v24 = vsel %vm50_vm0, %v1405_v17, %v1406_v16  ;;  %v56_v26 = vsel %vm50_vm0, %v1415_v15, %v1405_v17 }
  0x7b   :  { %v1420_v19 = vunpack.i.l.bf16 %v1789_v18  ;;  %v1792_v20 = vpop.permute.xlu0 %1408 }
  0x7c   :  { %v1411_v21 = vunpack.i.h.bf16 %v1792_v20  ;;  %v1410_v22 = vunpack.i.l.bf16 %v1792_v20 }
  0x7e   :  { %v1800_v23 = vpop.permute.xlu1 %1428  ;;  %v74_v25 = vsel %vm69_vm1, %v1410_v22, %v1411_v21  ;;  %v75_v27 = vsel %vm69_vm1, %v1420_v19, %v1410_v22 }
  0x7f   :  { %v1431_v28 = vunpack.i.h.bf16 %v1800_v23  ;;  %v1430_v29 = vunpack.i.l.bf16 %v1800_v23  ;;  %v1820_v30 = vpop.permute.xlu0 %1423  ;;  %v1296_v31 = vpack.c.bf16 %v74_v25, %v55_v24  ;;  %v1298_v32 = vpack.c.bf16 %v75_v27, %v56_v26 }
  0x80   :  { %v1426_v33 = vunpack.i.h.bf16 %v1820_v30  ;;  %v1425_v34 = vunpack.i.l.bf16 %v1820_v30 }
  0x81   :  { %1297 = vmatprep.subr.bf16.mxu0 %v1296_v31  ;;  %v112_v35 = vsel %vm107_vm3, %v1430_v29, %v1431_v28 }
  0x82   :  { %1299 = vmatpush1.bf16.msra.mxu0 %v1298_v32  ;;  %v1828_v36 = vpop.permute.xlu1 %1438  ;;  %v93_v37 = vsel %vm88_vm2, %v1425_v34, %v1426_v33 }
  0x83   :  { %v1440_v38 = vunpack.i.l.bf16 %v1828_v36  ;;  %v1835_v39 = vpop.permute.xlu0 %1433  ;;  %v1300_v40 = vpack.c.bf16 %v112_v35, %v93_v37  ;;  %v1441_v25 = vunpack.i.h.bf16 %v1828_v36 }
  0x84   :  { %v1435_v41 = vunpack.i.l.bf16 %v1835_v39  ;;  %v1436_v26 = vunpack.i.h.bf16 %v1835_v39 }
  0x85   :  { %1301 = vmatprep.subr.bf16.mxu0 %v1300_v40  ;;  %v113_v42 = vsel %vm107_vm3, %v1440_v38, %v1430_v29  ;;  %v54_v40 = vsel %vm50_vm0, %v1406_v16, %v1416_v9  ;;  %v111_v13 = vsel %vm107_vm3, %v1431_v28, %v1441_v25 }
  0x86   :  { %v1842_v43 = vpop.permute.xlu1 %114  ;;  %v94_v44 = vsel %vm88_vm2, %v1435_v41, %v1425_v34 }
  0x87   :  { %v1848_v45 = vpop.permute.xlu0 %1443  ;;  %v1302_v46 = vpack.c.bf16 %v113_v42, %v94_v44 }
  0x88   :  { %v1446_v47 = vunpack.i.h.bf16 %v1848_v45  ;;  %v1445_v48 = vunpack.i.l.bf16 %v1848_v45 }
  0x89   :  { %1303 = vmatpush1.bf16.msra.mxu0 %v1302_v46 }
  0x8a   :  { %v1853_v49 = vpop.permute.xlu1 %1453  ;;  %v130_v50 = vsel %vm126_vm4, %v1445_v48, %v1446_v47  ;;  %v131_v51 = vsel %vm126_vm4, %v1842_v43, %v1445_v48  ;;  %v92_v48 = vsel %vm88_vm2, %v1426_v33, %v1436_v26 }
  0x8b   :  { %v1456_v52 = vunpack.i.h.bf16 %v1853_v49  ;;  %v1455_v53 = vunpack.i.l.bf16 %v1853_v49  ;;  %v1866_v54 = vpop.permute.xlu0 %1448  ;;  %v1304_v55 = vpack.c.bf16 %v130_v50, %v1717_v4  ;;  %v1306_v56 = vpack.c.bf16 %v131_v51, %v1710_v2 }
  0x8c   :  { %v1451_v57 = vunpack.i.h.bf16 %v1866_v54  ;;  %v1450_v58 = vunpack.i.l.bf16 %v1866_v54  ;;  %v1421_v4 = vunpack.i.h.bf16 %v1789_v18  ;;  %v1318_v33 = vpack.c.bf16 %v111_v13, %v92_v48 }
  0x8d   :  { %1305 = vmatprep.subr.bf16.mxu0 %v1304_v55  ;;  %v168_v59 = vsel %vm164_vm5, %v1455_v53, %v1456_v52 }
  0x8e   :  { %1307 = vmatpush1.bf16.msra.mxu0 %v1306_v56  ;;  %v1876_v60 = vpop.permute.xlu1 %152  ;;  %v149_v61 = vsel %vm145_vm6, %v1450_v58, %v1451_v57  ;;  %v73_v29 = vsel %vm69_vm1, %v1411_v21, %v1421_v4 }
  0x8f   :  { %v169_v62 = vsel %vm164_vm5, %v1876_v60, %v1455_v53  ;;  %v1885_v63 = vpop.permute.xlu0 %133  ;;  %v1308_v2 = vpack.c.bf16 %v168_v59, %v149_v61  ;;  %v1314_v46 = vpack.c.bf16 %v73_v29, %v54_v40 }
  0x90   :  { %v150_v3 = vsel %vm145_vm6, %v1885_v63, %v1450_v58 }
  0x91   :  { %v1310_v5 = vpack.c.bf16 %v169_v62, %v150_v3  ;;  %1309 = vmatprep.subr.bf16.mxu0 %v1308_v2 }
  0x92   :  { %v1464_v6 = vpop.permute.xlu1 %1463 }
  0x93   :  { %v1465_v17 = vunpack.i.l.bf16 %v1464_v6  ;;  %v1459_v22 = vpop.permute.xlu0 %1458  ;;  %1311 = vmatpush1.bf16.msra.mxu0 %v1310_v5  ;;  %v1466_v42 = vunpack.i.h.bf16 %v1464_v6 }
  0x94   :  { %v1460_v24 = vunpack.i.l.bf16 %v1459_v22  ;;  %v1461_v20 = vunpack.i.h.bf16 %v1459_v22 }
  0x95   :  { %v72_v27 = vsel %vm69_vm1, %v1421_v4, %v1465_v17  ;;  %v71_v30 = vsel %vm69_vm1, %v1465_v17, %v1466_v42  ;;  %v70_v59 = vsel %vm69_vm1, %v1466_v42, %v1420_v19  ;;  %v1939_v4 = vld [vmem:[%s2561_s2] sm:$0xff] }
  0x96   :  { %v1474_v31 = vpop.permute.xlu1 %1473  ;;  %v53_v32 = vsel %vm50_vm0, %v1416_v9, %v1460_v24  ;;  %v52_v28 = vsel %vm50_vm0, %v1460_v24, %v1461_v20  ;;  %v51_v58 = vsel %vm50_vm0, %v1461_v20, %v1415_v15 }
  0x97   :  { %v1475_v34 = vunpack.i.l.bf16 %v1474_v31  ;;  %v1469_v35 = vpop.permute.xlu0 %1468  ;;  %v1312_v37 = vpack.c.bf16 %v72_v27, %v53_v32  ;;  %v1476_v51 = vunpack.i.h.bf16 %v1474_v31  ;;  %v1330_v18 = vpack.c.bf16 %v71_v30, %v52_v28 }
  0x98   :  { %v1470_v44 = vunpack.i.l.bf16 %v1469_v35  ;;  %v1471_v53 = vunpack.i.h.bf16 %v1469_v35  ;;  %v1328_v5 = vpack.c.bf16 %v70_v59, %v51_v58 }
  0x99   :  { %1313 = vmatprep.subr.bf16.mxu1 %v1312_v37  ;;  %v110_v21 = vsel %vm107_vm3, %v1441_v25, %v1475_v34  ;;  %v108_v15 = vsel %vm107_vm3, %v1476_v51, %v1440_v38  ;;  %v109_v6 = vsel %vm107_vm3, %v1475_v34, %v1476_v51  ;;  %v1651_v51 = vmov 0  }
  0x9a   :  { %1315 = vmatpush1.bf16.msra.mxu1 %v1314_v46  ;;  %v1917_v16 = vpop.permute.xlu1 %175  ;;  %v91_v50 = vsel %vm88_vm2, %v1436_v26, %v1470_v44  ;;  %v89_v12 = vsel %vm88_vm2, %v1471_v53, %v1435_v41  ;;  %v90_v9 = vsel %vm88_vm2, %v1470_v44, %v1471_v53  ;;  %1492 = vset.pattern.permute.xlu0 %v1651_v51 }
  0x9b   :  { %v174_v55 = vpop.permute.xlu0 %173  ;;  %v1316_v56 = vpack.c.bf16 %v110_v21, %v91_v50  ;;  %v1332_v41 = vpack.c.bf16 %v108_v15, %v89_v12  ;;  %1493 = vset.pattern.permute.xlu1 %v1651_v51 }
  0x9c   :  { %v187_v23 = vsel %vm183_vm7, %v174_v55, %v1917_v16 }
  0x9d   :  { %211 = vmatprep.subr.mxu0 %v187_v23  ;;  %1317 = vmatprep.subr.bf16.mxu1 %v1316_v56 }
  0x9e   :  { %1319 = vmatpush1.bf16.msra.mxu1 %v1318_v33  ;;  %v1479_v61 = vpop.permute.xlu1 %1478 }
  0x9f   :  { %v1481_v62 = vunpack.i.h.bf16 %v1479_v61  ;;  %v1480_v2 = vunpack.i.l.bf16 %v1479_v61  ;;  %v172_v3 = vpop.permute.xlu0 %171 }
  0xa0   :  { %v188_v19 = vsel %vm183_vm7, %v172_v3, %v174_v55  ;;  %v29_v55 = vld [vmem:[%s2562_s1] sm:$0x3f] }
  0xa1   :  { %212 = vmatpush1.msra.mxu0 %v188_v19  ;;  %v128_v39 = vsel %vm126_vm4, %v1480_v2, %v1481_v62  ;;  %v129_v36 = vsel %vm126_vm4, %v1446_v47, %v1480_v2  ;;  %v1334_v47 = vpack.c.bf16 %v109_v6, %v90_v9 }
  0xa2   :  { %1329 = vmatprep.subr.bf16.mxu0 %v1328_v5  ;;  %v1484_v38 = vpop.permute.xlu1 %1483  ;;  %1290 = vmatmul.mubr.msk.f32.vlgmr.msra.gmra.mrb[0].mxu0 %vm191_vm8, %v1939_v4  ;;  %v1320_v17 = vpack.c.bf16 %v128_v39, %v1739_v7  ;;  %v1322_v22 = vpack.c.bf16 %v129_v36, %v1700_v0 }
  0xa3   :  { %v125_v24 = vpop.permute.xlu0 %124  ;;  %1331 = vmatpush1.bf16.msra.mxu0 %v1330_v18  ;;  %401 = vmatprep.mubr.f32.mxu0 %v1649_v10  ;;  %v1486_v25 = vunpack.i.h.bf16 %v1484_v38  ;;  %v1485_v27 = vunpack.i.l.bf16 %v1484_v38 }
  0xa4   :  { %v132_v45 = vsel %vm126_vm4, %v125_v24, %v1842_v43  ;;  %1333 = vmatprep.subr.bf16.mxu0 %v1332_v41  ;;  %1321 = vmatprep.subr.bf16.mxu1 %v1320_v17  ;;  %v127_v7 = vsel %vm126_vm4, %v1481_v62, %v125_v24 }
  0xa5   :  { %v1336_v26 = vpack.c.bf16 %v132_v45, %v1705_v1  ;;  %1323 = vmatpush1.bf16.msra.mxu1 %v1322_v22  ;;  %v147_v34 = vsel %vm145_vm6, %v1485_v27, %v1486_v25  ;;  %v1338_v43 = vpack.c.bf16 %v127_v7, %v1744_v8  ;;  %v148_v37 = vsel %vm145_vm6, %v1451_v57, %v1485_v27 }
  0xa6   :  { %v144_v0 = vpop.permute.xlu1 %143 }
  0xa7   :  { %v1489_v29 = vpop.permute.xlu0 %1488  ;;  %1335 = vmatpush1.bf16.msra.mxu0 %v1334_v47  ;;  %v146_v8 = vsel %vm145_vm6, %v1486_v25, %v144_v0  ;;  %v151_v20 = vsel %vm145_vm6, %v144_v0, %v1885_v63 }
  0xa8   :  { %v1491_v31 = vunpack.i.h.bf16 %v1489_v29  ;;  %v1490_v32 = vunpack.i.l.bf16 %v1489_v29  ;;  %1337 = vmatprep.subr.bf16.mxu0 %v1336_v26 }
  0xaa   :  { %v178_v35 = vpop.permute.xlu1 %177  ;;  %v166_v1 = vsel %vm164_vm5, %v1490_v32, %v1491_v31  ;;  %v167_v40 = vsel %vm164_vm5, %v1456_v52, %v1490_v32 }
  0xab   :  { %v163_v42 = vpop.permute.xlu0 %162  ;;  %1339 = vmatpush1.bf16.msra.mxu0 %v1338_v43  ;;  %v1324_v44 = vpack.c.bf16 %v166_v1, %v147_v34  ;;  %v1326_v46 = vpack.c.bf16 %v167_v40, %v148_v37  ;;  %v484_v1 = vld [vmem:[%s2564_s3] sm:$0xff] }
  0xac   :  { %v165_v54 = vsel %vm164_vm5, %v1491_v31, %v163_v42  ;;  %v170_v49 = vsel %vm164_vm5, %v163_v42, %v1876_v60  ;;  %v186_v60 = vsel %vm183_vm7, %v1917_v16, %v178_v35  ;;  %v410_v16 = vshrl.u32 %v48_v11, 7 }
  0xad   :  { %v1340_v57 = vpack.c.bf16 %v170_v49, %v151_v20  ;;  %v1342_v52 = vpack.c.bf16 %v165_v54, %v146_v8  ;;  %1325 = vmatprep.subr.bf16.mxu1 %v1324_v44 }
  0xae   :  { %1327 = vmatpush1.bf16.msra.mxu1 %v1326_v46  ;;  %v182_v21 = vpop.permute.xlu1 %181  ;;  %v411_v53 = vsub.s32 0, %v410_v16  ;;  %v415_v56 = vsub.s32 1, %v410_v16  ;;  %v427_v12 = vsub.s32 4, %v410_v16  ;;  %v431_v18 = vsub.s32 5, %v410_v16 }
  0xaf   :  { %v180_v48 = vpop.permute.xlu0 %179  ;;  %1341 = vmatprep.subr.bf16.mxu0 %v1340_v57  ;;  %v189_v13 = vsel %vm183_vm7, %v182_v21, %v172_v3  ;;  %v419_v3 = vsub.s32 2, %v410_v16 }
  0xb0   :  { %1343 = vmatpush1.bf16.msra.mxu0 %v1342_v52  ;;  %v185_v63 = vsel %vm183_vm7, %v178_v35, %v180_v48  ;;  %v184_v50 = vsel %vm183_vm7, %v180_v48, %v182_v21  ;;  %v2014_v30 = vrot.slane %v29_v55, %v411_v53  ;;  %v2016_v23 = vrot.slane %v29_v55, %v415_v56  ;;  %v496_v35 = vld [vmem:[%s2563_s4] sm:$0xff] }
  0xb1   :  { %282 = vmatprep.subr.mxu1 %v185_v63  ;;  %353 = vmatprep.subr.mxu0 %v189_v13  ;;  %v2020_v15 = vrot.slane %v29_v55, %v419_v3  ;;  %v2024_v5 = vrot.slane %v29_v55, %v427_v12  ;;  %v2027_v36 = vrot.slane %v29_v55, %v431_v18 }
  0xb2   :  { %283 = vmatpush1.msra.mxu1 %v186_v60 }
  0xb3   :  { %1291 = vmatmul.mubr.msk.f32.vlgmr.msra.gmra.mrb[0].mxu1 %vm191_vm8, %v1939_v4 }
  0xb4   :  { %354 = vmatpush1.msra.mxu0 %v184_v50  ;;  %888 = vmatprep.mubr.f32.mxu1 %v1649_v10 }
  0xb5   :  { %1292 = vmatmul.mubr.msk.f32.vlgmr.msra.gmra.mrb[2].mxu0 %vm191_vm8, %v1939_v4  ;;  %v423_v4 = vsub.s32 3, %v410_v16 }
  0xb6   :  { %959 = vmatprep.mubr.f32.mxu0 %v1649_v10 }
  0xb7   :  { %v2022_v19 = vrot.slane %v29_v55, %v423_v4 }
 0x175   :  { %v261_v33 = vpop.f32.mrb[0].mxu0 }
 0x176   :  { %v439_v28 = vmul.f32 %v2014_v30, %v261_v33  ;;  %v263_v58 = vpop.f32.mrb[1].mxu0 }
 0x177   :  { %v440_v59 = vmul.f32 %v2016_v23, %v263_v58 }
 0x178   :  { %v452_v61 = vmul.f32 %v439_v28, %v439_v28 }
 0x179   :  { %v445_v62 = vadd.f32 %v440_v59, %v439_v28  ;;  %v453_v2 = vmul.f32 %v440_v59, %v440_v59 }
 0x17b   :  { %v458_v11 = vadd.f32 %v453_v2, %v452_v61 }
 0x186   :  { %v332_v6 = vpop.f32.mrb[0].mxu1 }
 0x187   :  { %v441_v9 = vmul.f32 %v2020_v15, %v332_v6  ;;  %v334_v39 = vpop.f32.mrb[1].mxu1 }
 0x188   :  { %v442_v38 = vmul.f32 %v2022_v19, %v334_v39  ;;  %v403_v41 = vpop.f32.mrb[2].mxu0 }
 0x189   :  { %v446_v17 = vadd.f32 %v445_v62, %v441_v9  ;;  %v454_v22 = vmul.f32 %v441_v9, %v441_v9  ;;  %v443_v24 = vmul.f32 %v2024_v5, %v403_v41  ;;  %v405_v25 = vpop.f32.mrb[3].mxu0 }
 0x18a   :  { %v455_v45 = vmul.f32 %v442_v38, %v442_v38  ;;  %v444_v7 = vmul.f32 %v2027_v36, %v405_v25 }
 0x18b   :  { %v459_v47 = vadd.f32 %v458_v11, %v454_v22  ;;  %v447_v26 = vadd.f32 %v446_v17, %v442_v38  ;;  %v456_v27 = vmul.f32 %v443_v24, %v443_v24 }
 0x18c   :  { %v457_v32 = vmul.f32 %v444_v7, %v444_v7 }
 0x18d   :  { %v448_v0 = vadd.f32 %v447_v26, %v443_v24  ;;  %v460_v29 = vadd.f32 %v459_v47, %v455_v45 }
 0x18f   :  { %v449_v31 = vadd.f32 %v448_v0, %v444_v7  ;;  %v461_v34 = vadd.f32 %v460_v29, %v456_v27 }
 0x191   :  { %450 = vadd.xlane.f32.xlu0 %v449_v31  ;;  %v462_v43 = vadd.f32 %v461_v34, %v457_v32 }
 0x193   :  { %463 = vadd.xlane.f32.xlu1 %v462_v43 }
 0x1a4   :  { %499 = vperm.xlu1 %1493, %v496_v35  }
 0x1a7   :  { %487 = vperm.xlu0 %1492, %v484_v1  }
 0x21e   :  { %v451_v37 = vpop.xlane.xlu0 %450 }
 0x21f   :  { %v465_v40 = vmul.f32 0.001953125, %v451_v37 }
 0x220   :  { %v464_v42 = vpop.xlane.xlu1 %463 }
 0x221   :  { %v466_v44 = vmul.f32 0.001953125, %v464_v42  ;;  %v467_v46 = vmul.f32 %v465_v40, %v465_v40  ;;  %v470_v49 = vsub.f32 %v261_v33, %v465_v40  ;;  %v471_v57 = vsub.f32 %v263_v58, %v465_v40 }
 0x222   :  { %v472_v52 = vsub.f32 %v332_v6, %v465_v40  ;;  %v473_v21 = vsub.f32 %v334_v39, %v465_v40  ;;  %v474_v13 = vsub.f32 %v403_v41, %v465_v40  ;;  %v475_v63 = vsub.f32 %v405_v25, %v465_v40 }
 0x223   :  { %v468_v8 = vsub.f32 %v466_v44, %v467_v46 }
 0x224   :  { %v500_v28 = vpop.permute.xlu1 %499 }
 0x225   :  { %v469_v20 = vmax.f32 %v468_v8, 0.0 }
 0x226   :  { %v488_v60 = vpop.permute.xlu0 %487 }
 0x227   :  { %v476_v54 = vadd.f32 1e-05, %v469_v20 }
 0x229   :  { %1584 = vrsqrt.f32 %v476_v54 }
 0x233   :  { %v1585_v48 = vpop.eup %1584 }
 0x234   :  { %v478_v50 = vmul.f32 %v1585_v48, %v470_v49  ;;  %v479_v51 = vmul.f32 %v1585_v48, %v471_v57  ;;  %v480_v16 = vmul.f32 %v1585_v48, %v472_v52  ;;  %v481_v53 = vmul.f32 %v1585_v48, %v473_v21 }
 0x235   :  { %v482_v55 = vmul.f32 %v1585_v48, %v474_v13  ;;  %v483_v56 = vmul.f32 %v1585_v48, %v475_v63 }
 0x236   :  { %v490_v59 = vmul.f32 %v488_v60, %v478_v50  ;;  %v491_v61 = vmul.f32 %v488_v60, %v479_v51  ;;  %v492_v62 = vmul.f32 %v488_v60, %v480_v16  ;;  %v493_v2 = vmul.f32 %v488_v60, %v481_v53 }
 0x237   :  { %v494_v11 = vmul.f32 %v488_v60, %v482_v55  ;;  %v495_v33 = vmul.f32 %v488_v60, %v483_v56 }
 0x238   :  { %v2038_v58 = vadd.f32 %v500_v28, %v490_v59  ;;  %v2040_v3 = vadd.f32 %v500_v28, %v491_v61  ;;  %v2042_v4 = vadd.f32 %v500_v28, %v492_v62  ;;  %v2044_v12 = vadd.f32 %v500_v28, %v493_v2 }
 0x239   :  { %v2046_v18 = vadd.f32 %v500_v28, %v494_v11  ;;  %v2048_v6 = vadd.f32 %v500_v28, %v495_v33 }
 0x23a   :  { %v2051_v9 = vmul.f32 0.70710677, %v2038_v58  ;;  %v2054_v39 = vmul.f32 0.70710677, %v2040_v3  ;;  %v2057_v38 = vmul.f32 0.70710677, %v2042_v4 }
 0x23b   :  { %v2060_v41 = vmul.f32 0.70710677, %v2044_v12  ;;  %v2063_v17 = vmul.f32 0.70710677, %v2046_v18  ;;  %v2066_v22 = vmul.f32 0.70710677, %v2048_v6 }
 0x23c   :  { %v520_v24 = vand.u32 2147483647, %v2051_v9  ;;  %v521_v25 = vand.u32 2147483647, %v2054_v39  ;;  %v522_v45 = vand.u32 2147483647, %v2057_v38 }
 0x23d   :  { %v523_v47 = vand.u32 2147483647, %v2060_v41  ;;  %v524_v26 = vand.u32 2147483647, %v2063_v17  ;;  %v525_v27 = vand.u32 2147483647, %v2066_v22 }
 0x23e   :  { %v526_v7 = vmul.f32 0.3275911, %v520_v24  ;;  %v527_v0 = vmul.f32 0.3275911, %v521_v25  ;;  %v528_v29 = vmul.f32 0.3275911, %v522_v45 }
 0x23f   :  { %v529_v31 = vmul.f32 0.3275911, %v523_v47  ;;  %v530_v32 = vmul.f32 0.3275911, %v524_v26  ;;  %v531_v34 = vmul.f32 0.3275911, %v525_v27 }
 0x240   :  { %v532_v43 = vadd.f32 1.0, %v526_v7  ;;  %v533_v35 = vadd.f32 1.0, %v527_v0  ;;  %v534_v1 = vadd.f32 1.0, %v528_v29  ;;  %v604_v44 = vsub.f32 0.0, %v520_v24 }
 0x241   :  { %v535_v37 = vadd.f32 1.0, %v529_v31  ;;  %v536_v40 = vadd.f32 1.0, %v530_v32  ;;  %v537_v42 = vadd.f32 1.0, %v531_v34  ;;  %v605_v46 = vsub.f32 0.0, %v521_v25 }
 0x242   :  { %1586 = vrcp.f32 %v532_v43  ;;  %v606_v8 = vsub.f32 0.0, %v522_v45  ;;  %v607_v20 = vsub.f32 0.0, %v523_v47  ;;  %v609_v54 = vsub.f32 0.0, %v525_v27 }
 0x243   :  { %1588 = vrcp.f32 %v533_v35  ;;  %v610_v49 = vmul.f32 %v604_v44, %v520_v24  ;;  %v608_v52 = vsub.f32 0.0, %v524_v26  ;;  %v611_v21 = vmul.f32 %v605_v46, %v521_v25 }
 0x244   :  { %1590 = vrcp.f32 %v534_v1  ;;  %v612_v63 = vmul.f32 %v606_v8, %v522_v45  ;;  %v613_v51 = vmul.f32 %v607_v20, %v523_v47  ;;  %v615_v56 = vmul.f32 %v609_v54, %v525_v27 }
 0x245   :  { %1592 = vrcp.f32 %v535_v37  ;;  %v616_v28 = vmul.f32 1.442695, %v610_v49  ;;  %v614_v2 = vmul.f32 %v608_v52, %v524_v26  ;;  %v618_v11 = vmul.f32 1.442695, %v611_v21 }
 0x246   :  { %1594 = vrcp.f32 %v536_v40  ;;  %v620_v47 = vmul.f32 1.442695, %v612_v63  ;;  %v622_v29 = vmul.f32 1.442695, %v613_v51  ;;  %v626_v26 = vmul.f32 1.442695, %v615_v56 }
 0x247   :  { %1596 = vrcp.f32 %v537_v42  ;;  %v624_v52 = vmul.f32 1.442695, %v614_v2  ;;  %vm640_vm9 = vcmp.ge.f32.partialorder %v2051_v9, 0.0  ;;  %vm641_vm10 = vcmp.ge.f32.partialorder %v2054_v39, 0.0 }
 0x248   :  { %1598 = vpow2.f32 %v616_v28  ;;  %vm642_vm11 = vcmp.ge.f32.partialorder %v2057_v38, 0.0  ;;  %vm645_vm12 = vcmp.ge.f32.partialorder %v2066_v22, 0.0  ;;  %vm643_vm13 = vcmp.ge.f32.partialorder %v2060_v41, 0.0 }
 0x249   :  { %1600 = vpow2.f32 %v618_v11  ;;  %vm644_vm14 = vcmp.ge.f32.partialorder %v2063_v17, 0.0  ;;  %v512_v41 = vmul.f32 0.5, %v2046_v18 }
 0x24a   :  { %1602 = vpow2.f32 %v620_v47 }
 0x24b   :  { %1604 = vpow2.f32 %v626_v26 }
 0x24c   :  { %v2074_v57 = vpop.eup %1586  ;;  %1606 = vpow2.f32 %v622_v29 }
 0x24d   :  { %v2076_v48 = vpop.eup %1588  ;;  %v550_v13 = vmul.f32 1.0614054, %v2074_v57  ;;  %1608 = vpow2.f32 %v624_v52 }
 0x24e   :  { %v2079_v60 = vpop.eup %1590  ;;  %v551_v50 = vmul.f32 1.0614054, %v2076_v48 }
 0x24f   :  { %v2082_v16 = vpop.eup %1592  ;;  %v552_v53 = vmul.f32 1.0614054, %v2079_v60  ;;  %v556_v55 = vadd.f32 -1.4531521, %v550_v13 }
 0x250   :  { %v2085_v59 = vpop.eup %1594  ;;  %v553_v61 = vmul.f32 1.0614054, %v2082_v16  ;;  %v557_v62 = vadd.f32 -1.4531521, %v551_v50 }
 0x251   :  { %v2088_v33 = vpop.eup %1596  ;;  %v554_v24 = vmul.f32 1.0614054, %v2085_v59  ;;  %v558_v25 = vadd.f32 -1.4531521, %v552_v53  ;;  %v562_v45 = vmul.f32 %v2074_v57, %v556_v55 }
 0x252   :  { %v555_v7 = vmul.f32 1.0614054, %v2088_v33  ;;  %v559_v0 = vadd.f32 -1.4531521, %v553_v61  ;;  %v563_v27 = vmul.f32 %v2076_v48, %v557_v62 }
 0x253   :  { %v560_v31 = vadd.f32 -1.4531521, %v554_v24  ;;  %v564_v32 = vmul.f32 %v2079_v60, %v558_v25  ;;  %v568_v34 = vadd.f32 1.4214138, %v562_v45 }
 0x254   :  { %v561_v43 = vadd.f32 -1.4531521, %v555_v7  ;;  %v565_v35 = vmul.f32 %v2082_v16, %v559_v0  ;;  %v569_v1 = vadd.f32 1.4214138, %v563_v27  ;;  %v1599_v0 = vpop.eup %1598 }
 0x255   :  { %v566_v37 = vmul.f32 %v2085_v59, %v560_v31  ;;  %v570_v40 = vadd.f32 1.4214138, %v564_v32  ;;  %v574_v42 = vmul.f32 %v2074_v57, %v568_v34  ;;  %v1601_v32 = vpop.eup %1600 }
 0x256   :  { %v567_v44 = vmul.f32 %v2088_v33, %v561_v43  ;;  %v571_v46 = vadd.f32 1.4214138, %v565_v35  ;;  %v575_v8 = vmul.f32 %v2076_v48, %v569_v1  ;;  %v1603_v35 = vpop.eup %1602 }
 0x257   :  { %v572_v20 = vadd.f32 1.4214138, %v566_v37  ;;  %v576_v54 = vmul.f32 %v2079_v60, %v570_v40  ;;  %v580_v49 = vadd.f32 -0.28449672, %v574_v42 }
 0x258   :  { %v573_v21 = vadd.f32 1.4214138, %v567_v44  ;;  %v577_v13 = vmul.f32 %v2082_v16, %v571_v46  ;;  %v581_v63 = vadd.f32 -0.28449672, %v575_v8 }
 0x259   :  { %v578_v50 = vmul.f32 %v2085_v59, %v572_v20  ;;  %v582_v51 = vadd.f32 -0.28449672, %v576_v54  ;;  %v586_v53 = vmul.f32 %v2074_v57, %v580_v49  ;;  %v1605_v20 = vpop.eup %1604 }
 0x25a   :  { %v579_v55 = vmul.f32 %v2088_v33, %v573_v21  ;;  %v583_v56 = vadd.f32 -0.28449672, %v577_v13  ;;  %v587_v28 = vmul.f32 %v2076_v48, %v581_v63  ;;  %v1607_v52 = vpop.eup %1606 }
 0x25b   :  { %v584_v61 = vadd.f32 -0.28449672, %v578_v50  ;;  %v588_v62 = vmul.f32 %v2079_v60, %v582_v51  ;;  %v592_v2 = vadd.f32 0.2548296, %v586_v53 }
 0x25c   :  { %v585_v11 = vadd.f32 -0.28449672, %v579_v55  ;;  %v589_v24 = vmul.f32 %v2082_v16, %v583_v56  ;;  %v593_v25 = vadd.f32 0.2548296, %v587_v28  ;;  %v510_v28 = vmul.f32 0.5, %v2042_v4 }
 0x25d   :  { %v590_v45 = vmul.f32 %v2085_v59, %v584_v61  ;;  %v594_v47 = vadd.f32 0.2548296, %v588_v62  ;;  %v598_v7 = vmul.f32 %v2074_v57, %v592_v2 }
 0x25e   :  { %v591_v27 = vmul.f32 %v2088_v33, %v585_v11  ;;  %v595_v31 = vadd.f32 0.2548296, %v589_v24  ;;  %v599_v29 = vmul.f32 %v2076_v48, %v593_v25  ;;  %v508_v48 = vmul.f32 0.5, %v2038_v58 }
 0x25f   :  { %v596_v34 = vadd.f32 0.2548296, %v590_v45  ;;  %v600_v26 = vmul.f32 %v2079_v60, %v594_v47  ;;  %v628_v43 = vmul.f32 %v1599_v0, %v598_v7  ;;  %v509_v58 = vmul.f32 0.5, %v2040_v3 }
 0x260   :  { %v597_v1 = vadd.f32 0.2548296, %v591_v27  ;;  %v629_v37 = vmul.f32 %v1601_v32, %v599_v29  ;;  %v601_v40 = vmul.f32 %v2082_v16, %v595_v31  ;;  %v1609_v16 = vpop.eup %1608  ;;  %v513_v45 = vmul.f32 0.5, %v2048_v6 }
 0x261   :  { %v630_v42 = vmul.f32 %v1603_v35, %v600_v26  ;;  %v634_v44 = vsub.f32 1.0, %v628_v43  ;;  %v602_v57 = vmul.f32 %v2085_v59, %v596_v34  ;;  %v511_v35 = vmul.f32 0.5, %v2044_v12 }
 0x262   :  { %v603_v46 = vmul.f32 %v2088_v33, %v597_v1  ;;  %v635_v8 = vsub.f32 1.0, %v629_v37  ;;  %v631_v13 = vmul.f32 %v1607_v52, %v601_v40 }
 0x263   :  { %v636_v54 = vsub.f32 1.0, %v630_v42  ;;  %v646_v49 = vsub.f32 0.0, %v634_v44  ;;  %v632_v33 = vmul.f32 %v1609_v16, %v602_v57 }
 0x264   :  { %v633_v60 = vmul.f32 %v1605_v20, %v603_v46  ;;  %v647_v21 = vsub.f32 0.0, %v635_v8  ;;  %v637_v62 = vsub.f32 1.0, %v631_v13 }
 0x265   :  { %v648_v59 = vsub.f32 0.0, %v636_v54  ;;  %v652_v63 = vsel %vm640_vm9, %v634_v44, %v646_v49  ;;  %v638_v38 = vsub.f32 1.0, %v632_v33 }
 0x266   :  { %v639_v50 = vsub.f32 1.0, %v633_v60  ;;  %v653_v51 = vsel %vm641_vm10, %v635_v8, %v647_v21  ;;  %v658_v53 = vadd.f32 1.0, %v652_v63  ;;  %v649_v0 = vsub.f32 0.0, %v637_v62 }
 0x267   :  { %v654_v55 = vsel %vm642_vm11, %v636_v54, %v648_v59  ;;  %v659_v56 = vadd.f32 1.0, %v653_v51  ;;  %v650_v27 = vsub.f32 0.0, %v638_v38 }
 0x268   :  { %v651_v9 = vsub.f32 0.0, %v639_v50  ;;  %v660_v61 = vadd.f32 1.0, %v654_v55  ;;  %v664_v39 = vmul.f32 %v658_v53, %v508_v48  ;;  %v655_v29 = vsel %vm643_vm13, %v637_v62, %v649_v0 }
 0x269   :  { %v665_v2 = vmul.f32 %v659_v56, %v509_v58  ;;  %v656_v32 = vsel %vm644_vm14, %v638_v38, %v650_v27  ;;  %v661_v34 = vadd.f32 1.0, %v655_v29 }
 0x26a   :  { %v657_v11 = vsel %vm645_vm12, %v639_v50, %v651_v9  ;;  %v666_v24 = vmul.f32 %v660_v61, %v510_v28  ;;  %v2124_v25 = vmul.f32 %v664_v39, %v2014_v30  ;;  %v662_v26 = vadd.f32 1.0, %v656_v32 }
 0x26b   :  { %v663_v3 = vadd.f32 1.0, %v657_v11  ;;  %v2128_v47 = vmul.f32 %v665_v2, %v2016_v23  ;;  %v667_v17 = vmul.f32 %v661_v34, %v511_v35 }
 0x26c   :  { %v2131_v7 = vmul.f32 %v666_v24, %v2020_v15  ;;  %v668_v1 = vmul.f32 %v662_v26, %v512_v41 }
 0x26d   :  { %v669_v4 = vmul.f32 %v663_v3, %v513_v45  ;;  %v1494_v22 = vpack.i.bf16 %v2128_v47, %v2124_v25  ;;  %v2154_v37 = vmul.f32 %v667_v17, %v2022_v19 }
 0x26e   :  { %v1534_v43 = vpack.i.bf16 %v2131_v7, %v2128_v47  ;;  %v2157_v40 = vmul.f32 %v668_v1, %v2024_v5 }
 0x26f   :  { %v2136_v31 = vmul.f32 %v669_v4, %v2027_v36  ;;  %1495 = vrot.lane.b32.xlu1 %v1494_v22, %s1642_s13 }
 0x270   :  { %v1549_v12 = vpack.i.bf16 %v2157_v40, %v2154_v37 }
 0x271   :  { %v1524_v6 = vpack.i.bf16 %v2131_v7, %v2136_v31 }
 0x273   :  { %1525 = vrot.lane.b32.xlu0 %v1524_v6, %s1645_s16  ;;  %1500 = vrot.lane.b32.xlu1 %v1494_v22, %s1643_s14 }
 0x277   :  { %1535 = vrot.lane.b32.xlu0 %v1534_v43, %s1646_s17  ;;  %1505 = vrot.lane.b32.xlu1 %v1524_v6, %s1642_s13 }
 0x27b   :  { %1540 = vrot.lane.b32.xlu0 %v1534_v43, %s1648_s19  ;;  %1510 = vrot.lane.b32.xlu1 %v1524_v6, %s1643_s14 }
 0x27f   :  { %766 = vrot.lane.b32.xlu0 %v2124_v25, %s1648_s19  ;;  %1515 = vrot.lane.b32.xlu1 %v1494_v22, %s1645_s16 }
 0x283   :  { %1550 = vrot.lane.b32.xlu0 %v1549_v12, %s1642_s13  ;;  %1520 = vrot.lane.b32.xlu1 %v1494_v22, %s1644_s15 }
 0x287   :  { %1560 = vrot.lane.b32.xlu0 %v1549_v12, %s1645_s16  ;;  %1530 = vrot.lane.b32.xlu1 %v1524_v6, %s1644_s15 }
 0x28b   :  { %804 = vrot.lane.b32.xlu0 %v2128_v47, %s1650_s24  ;;  %748 = vrot.lane.b32.xlu1 %v2124_v25, %s1646_s17 }
 0x28f   :  { %802 = vrot.lane.b32.xlu0 %v2124_v25, %s1650_s24  ;;  %1545 = vrot.lane.b32.xlu1 %v1534_v43, %s1647_s18 }
 0x293   :  { %758 = vrot.lane.b32.xlu0 %v2136_v31, %s1646_s17  ;;  %784 = vrot.lane.b32.xlu1 %v2124_v25, %s1647_s18 }
 0x297   :  { %1580 = vrot.lane.b32.xlu0 %v1549_v12, %s1647_s18  ;;  %1555 = vrot.lane.b32.xlu1 %v1549_v12, %s1643_s14 }
 0x29b   :  { %794 = vrot.lane.b32.xlu0 %v2136_v31, %s1647_s18  ;;  %1565 = vrot.lane.b32.xlu1 %v1549_v12, %s1644_s15 }
 0x29f   :  { %810 = vrot.lane.b32.xlu0 %v2157_v40, %s1650_s24  ;;  %806 = vrot.lane.b32.xlu1 %v2131_v7, %s1650_s24 }
 0x2a3   :  { %1570 = vrot.lane.b32.xlu1 %v1549_v12, %s1646_s17 }
 0x2a7   :  { %1575 = vrot.lane.b32.xlu1 %v1549_v12, %s1648_s19 }
 0x2ab   :  { %776 = vrot.lane.b32.xlu1 %v2136_v31, %s1648_s19 }
 0x2af   :  { %808 = vrot.lane.b32.xlu1 %v2154_v37, %s1650_s24 }
 0x2b3   :  { %812 = vrot.lane.b32.xlu1 %v2136_v31, %s1650_s24 }
 0x2e1   :  { %v2196_v18 = vpop.permute.xlu1 %1495 }
 0x2e2   :  { %v1498_v42 = vunpack.i.h.bf16 %v2196_v18  ;;  %v1497_v44 = vunpack.i.l.bf16 %v2196_v18 }
 0x2e4   :  { %v692_v48 = vsel %vm50_vm0, %v1497_v44, %v1498_v42 }
 0x2e5   :  { %v2200_v57 = vpop.permute.xlu0 %1525  ;;  %v2202_v46 = vpop.permute.xlu1 %1500 }
 0x2e6   :  { %v1503_v8 = vunpack.i.h.bf16 %v2202_v46  ;;  %v1502_v20 = vunpack.i.l.bf16 %v2202_v46  ;;  %v1527_v45 = vunpack.i.l.bf16 %v2200_v57 }
 0x2e8   :  { %v710_v54 = vsel %vm69_vm1, %v1502_v20, %v1503_v8 }
 0x2e9   :  { %v2214_v49 = vpop.permute.xlu0 %1535  ;;  %v2216_v52 = vpop.permute.xlu1 %1505  ;;  %v1344_v60 = vpack.c.bf16 %v710_v54, %v692_v48 }
 0x2ea   :  { %v1507_v21 = vunpack.i.l.bf16 %v2216_v52  ;;  %v1538_v39 = vunpack.i.h.bf16 %v2214_v49  ;;  %v1537_v62 = vunpack.i.l.bf16 %v2214_v49 }
 0x2eb   :  { %1345 = vmatprep.subr.bf16.mxu1 %v1344_v60 }
 0x2ec   :  { %v693_v63 = vsel %vm50_vm0, %v1507_v21, %v1497_v44  ;;  %v763_v4 = vsel %vm126_vm4, %v1537_v62, %v1538_v39 }
 0x2ed   :  { %v2219_v16 = vpop.permute.xlu0 %1540  ;;  %v2221_v13 = vpop.permute.xlu1 %1510  ;;  %v1352_v34 = vpack.c.bf16 %v763_v4, %v2128_v47 }
 0x2ee   :  { %v1512_v59 = vunpack.i.l.bf16 %v2221_v13  ;;  %v1543_v26 = vunpack.i.h.bf16 %v2219_v16  ;;  %v1542_v43 = vunpack.i.l.bf16 %v2219_v16  ;;  %v1513_v60 = vunpack.i.h.bf16 %v2221_v13 }
 0x2f0   :  { %v711_v33 = vsel %vm69_vm1, %v1512_v59, %v1502_v20  ;;  %v781_v47 = vsel %vm145_vm6, %v1542_v43, %v1543_v26 }
 0x2f1   :  { %v2232_v50 = vpop.permute.xlu0 %766  ;;  %v1346_v51 = vpack.c.bf16 %v711_v33, %v693_v63  ;;  %v2234_v53 = vpop.permute.xlu1 %1515 }
 0x2f2   :  { %v1518_v58 = vunpack.i.h.bf16 %v2234_v53  ;;  %v1517_v55 = vunpack.i.l.bf16 %v2234_v53  ;;  %v782_v48 = vsel %vm145_vm6, %v2232_v50, %v1542_v43 }
 0x2f3   :  { %1347 = vmatpush1.bf16.msra.mxu1 %v1346_v51 }
 0x2f4   :  { %v728_v2 = vsel %vm88_vm2, %v1517_v55, %v1518_v58  ;;  %v729_v22 = vsel %vm88_vm2, %v1527_v45, %v1517_v55  ;;  %v1508_v55 = vunpack.i.h.bf16 %v2216_v52 }
 0x2f5   :  { %v2238_v56 = vpop.permute.xlu1 %1520  ;;  %v2240_v28 = vpop.permute.xlu0 %1550 }
 0x2f6   :  { %v1523_v9 = vunpack.i.h.bf16 %v2238_v56  ;;  %v1522_v61 = vunpack.i.l.bf16 %v2238_v56  ;;  %v1552_v33 = vunpack.i.l.bf16 %v2240_v28  ;;  %v691_v46 = vsel %vm50_vm0, %v1498_v42, %v1508_v55 }
 0x2f8   :  { %v746_v38 = vsel %vm107_vm3, %v1522_v61, %v1523_v9  ;;  %v690_v4 = vsel %vm50_vm0, %v1508_v55, %v1552_v33 }
 0x2f9   :  { %v2252_v11 = vpop.permute.xlu1 %1530  ;;  %v1348_v24 = vpack.c.bf16 %v746_v38, %v728_v2  ;;  %v2264_v0 = vpop.permute.xlu0 %1560 }
 0x2fa   :  { %v1532_v3 = vunpack.i.l.bf16 %v2252_v11  ;;  %v1533_v2 = vunpack.i.h.bf16 %v2252_v11  ;;  %v1562_v38 = vunpack.i.l.bf16 %v2264_v0 }
 0x2fb   :  { %1349 = vmatprep.subr.bf16.mxu1 %v1348_v24 }
 0x2fc   :  { %v747_v27 = vsel %vm107_vm3, %v1532_v3, %v1522_v61 }
 0x2fd   :  { %v1350_v6 = vpack.c.bf16 %v747_v27, %v729_v22  ;;  %v2270_v29 = vpop.permute.xlu1 %748  ;;  %v805_v17 = vpop.permute.xlu0 %804  ;;  %v1528_v27 = vunpack.i.h.bf16 %v2200_v57 }
 0x2fe   :  { %v764_v32 = vsel %vm126_vm4, %v2270_v29, %v1537_v62  ;;  %v709_v62 = vsel %vm69_vm1, %v1503_v8, %v1513_v60 }
 0x2ff   :  { %1351 = vmatpush1.bf16.msra.mxu1 %v1350_v6  ;;  %v1354_v35 = vpack.c.bf16 %v764_v32, %v2124_v25  ;;  %v1362_v32 = vpack.c.bf16 %v709_v62, %v691_v46  ;;  %v726_v18 = vsel %vm88_vm2, %v1528_v27, %v1562_v38 }
 0x300   :  { %1353 = vmatprep.subr.bf16.mxu1 %v1352_v34  ;;  %v1553_v34 = vunpack.i.h.bf16 %v2240_v28 }
 0x301   :  { %v2279_v41 = vpop.permute.xlu1 %1545  ;;  %v2301_v51 = vpop.permute.xlu0 %802 }
 0x302   :  { %v1548_v1 = vunpack.i.h.bf16 %v2279_v41  ;;  %v1547_v12 = vunpack.i.l.bf16 %v2279_v41  ;;  %v688_v13 = vsel %vm50_vm0, %v1553_v34, %v1507_v21  ;;  %v818_v52 = vsel %vm183_vm7, %v2301_v51, %v805_v17 }
 0x303   :  { %1355 = vmatpush1.bf16.msra.mxu1 %v1354_v35 }
 0x304   :  { %v799_v44 = vsel %vm164_vm5, %v1547_v12, %v1548_v1 }
 0x305   :  { %v2291_v20 = vpop.permute.xlu1 %784  ;;  %v1356_v25 = vpack.c.bf16 %v799_v44, %v781_v47  ;;  %v759_v43 = vpop.permute.xlu0 %758  ;;  %v745_v47 = vsel %vm107_vm3, %v1523_v9, %v1533_v2  ;;  %v1563_v44 = vunpack.i.h.bf16 %v2264_v0  ;;  %v727_v9 = vsel %vm88_vm2, %v1518_v58, %v1528_v27 }
 0x306   :  { %v800_v54 = vsel %vm164_vm5, %v2291_v20, %v1547_v12  ;;  %v689_v58 = vsel %vm50_vm0, %v1552_v33, %v1553_v34 }
 0x307   :  { %v1358_v63 = vpack.c.bf16 %v800_v54, %v782_v48  ;;  %1357 = vmatprep.subr.bf16.mxu1 %v1356_v25  ;;  %v1366_v54 = vpack.c.bf16 %v745_v47, %v727_v9  ;;  %v724_v11 = vsel %vm88_vm2, %v1563_v44, %v1527_v45  ;;  %v725_v57 = vsel %vm88_vm2, %v1562_v38, %v1563_v44 }
 0x309   :  { %v1556_v56 = vpop.permute.xlu1 %1555  ;;  %1359 = vmatpush1.bf16.msra.mxu1 %v1358_v63  ;;  %v1581_v63 = vpop.permute.xlu0 %1580 }
 0x30a   :  { %v1557_v61 = vunpack.i.l.bf16 %v1556_v56  ;;  %v1558_v24 = vunpack.i.h.bf16 %v1556_v56  ;;  %v765_v56 = vsel %vm126_vm4, %v759_v43, %v2270_v29  ;;  %v1582_v45 = vunpack.i.l.bf16 %v1581_v63 }
 0x30c   :  { %v708_v22 = vsel %vm69_vm1, %v1513_v60, %v1557_v61  ;;  %v706_v28 = vsel %vm69_vm1, %v1558_v24, %v1512_v59  ;;  %v707_v0 = vsel %vm69_vm1, %v1557_v61, %v1558_v24  ;;  %v2349_v59 = vld [vmem:[%s2565_s5] sm:$0xff]  ;;  %v798_v49 = vsel %vm164_vm5, %v1548_v1, %v1582_v45 }
 0x30d   :  { %v1566_v6 = vpop.permute.xlu1 %1565  ;;  %v1360_v8 = vpack.c.bf16 %v708_v22, %v690_v4  ;;  %v1376_v21 = vpack.c.bf16 %v706_v28, %v688_v13  ;;  %v1378_v55 = vpack.c.bf16 %v707_v0, %v689_v58  ;;  %v1384_v22 = vpack.c.bf16 %v765_v56, %v2136_v31 }
 0x30e   :  { %v1568_v35 = vunpack.i.h.bf16 %v1566_v6  ;;  %v1567_v12 = vunpack.i.l.bf16 %v1566_v6 }
 0x30f   :  { %1361 = vmatprep.subr.bf16.mxu0 %v1360_v8 }
 0x310   :  { %1363 = vmatpush1.bf16.msra.mxu0 %v1362_v32  ;;  %v744_v42 = vsel %vm107_vm3, %v1533_v2, %v1567_v12  ;;  %v742_v53 = vsel %vm107_vm3, %v1568_v35, %v1532_v3  ;;  %v743_v3 = vsel %vm107_vm3, %v1567_v12, %v1568_v35  ;;  %v1583_v2 = vunpack.i.h.bf16 %v1581_v63 }
 0x311   :  { %v2337_v25 = vpop.permute.xlu1 %806  ;;  %v1364_v48 = vpack.c.bf16 %v744_v42, %v726_v18  ;;  %v1382_v24 = vpack.c.bf16 %v743_v3, %v725_v57 }
 0x312   :  { %v817_v60 = vsel %vm183_vm7, %v805_v17, %v2337_v25  ;;  %v1380_v17 = vpack.c.bf16 %v742_v53, %v724_v11  ;;  %v797_v41 = vsel %vm164_vm5, %v1582_v45, %v1583_v2 }
 0x313   :  { %840 = vmatprep.subr.mxu1 %v817_v60  ;;  %1365 = vmatprep.subr.bf16.mxu0 %v1364_v48 }
 0x314   :  { %841 = vmatpush1.msra.mxu1 %v818_v52  ;;  %1367 = vmatpush1.bf16.msra.mxu0 %v1366_v54 }
 0x315   :  { %v1571_v33 = vpop.permute.xlu1 %1570  ;;  %1377 = vmatprep.subr.bf16.mxu1 %v1376_v21  ;;  %1293 = vmatmul.mubr.msk.f32.vlgmr.msra.gmra.mrb[2].mxu1 %vm191_vm8, %v2349_v59 }
 0x316   :  { %v1573_v61 = vunpack.i.h.bf16 %v1571_v33  ;;  %v1572_v62 = vunpack.i.l.bf16 %v1571_v33  ;;  %1379 = vmatpush1.bf16.msra.mxu1 %v1378_v55  ;;  %1030 = vmatprep.mubr.f32.mxu1 %v1649_v10 }
 0x317   :  { %1381 = vmatprep.subr.bf16.mxu1 %v1380_v17 }
 0x318   :  { %v762_v4 = vsel %vm126_vm4, %v1538_v39, %v1572_v62  ;;  %v761_v29 = vsel %vm126_vm4, %v1572_v62, %v1573_v61  ;;  %v760_v10 = vsel %vm126_vm4, %v1573_v61, %v759_v43  ;;  %v795_v39 = vpop.permute.xlu0 %794 }
 0x319   :  { %v1370_v27 = vpack.c.bf16 %v762_v4, %v2131_v7  ;;  %v1576_v38 = vpop.permute.xlu1 %1575  ;;  %v1368_v46 = vpack.c.bf16 %v761_v29, %v2154_v37  ;;  %v1386_v31 = vpack.c.bf16 %v760_v10, %v2157_v40  ;;  %v796_v43 = vsel %vm164_vm5, %v1583_v2, %v795_v39 }
 0x31a   :  { %v1578_v6 = vunpack.i.h.bf16 %v1576_v38  ;;  %v1577_v8 = vunpack.i.l.bf16 %v1576_v38  ;;  %1383 = vmatpush1.bf16.msra.mxu1 %v1382_v24  ;;  %v801_v40 = vsel %vm164_vm5, %v795_v39, %v2291_v20 }
 0x31b   :  { %1369 = vmatprep.subr.bf16.mxu0 %v1368_v46  ;;  %1385 = vmatprep.subr.bf16.mxu1 %v1384_v22 }
 0x31c   :  { %v780_v7 = vsel %vm145_vm6, %v1543_v26, %v1577_v8  ;;  %1371 = vmatpush1.bf16.msra.mxu0 %v1370_v27  ;;  %v779_v37 = vsel %vm145_vm6, %v1577_v8, %v1578_v6  ;;  %v811_v47 = vpop.permute.xlu0 %810 }
 0x31d   :  { %v1374_v32 = vpack.c.bf16 %v798_v49, %v780_v7  ;;  %v777_v34 = vpop.permute.xlu1 %776  ;;  %v1372_v1 = vpack.c.bf16 %v797_v41, %v779_v37 }
 0x31e   :  { %v778_v16 = vsel %vm145_vm6, %v1578_v6, %v777_v34  ;;  %v783_v26 = vsel %vm145_vm6, %v777_v34, %v2232_v50  ;;  %1387 = vmatpush1.bf16.msra.mxu1 %v1386_v31 }
 0x31f   :  { %v1388_v35 = vpack.c.bf16 %v801_v40, %v783_v26  ;;  %v1390_v12 = vpack.c.bf16 %v796_v43, %v778_v16  ;;  %1373 = vmatprep.subr.bf16.mxu0 %v1372_v1 }
 0x320   :  { %1375 = vmatpush1.bf16.msra.mxu0 %v1374_v32 }
 0x321   :  { %v809_v44 = vpop.permute.xlu1 %808  ;;  %1389 = vmatprep.subr.bf16.mxu1 %v1388_v35 }
 0x322   :  { %v816_v18 = vsel %vm183_vm7, %v2337_v25, %v809_v44  ;;  %1391 = vmatpush1.bf16.msra.mxu1 %v1390_v12  ;;  %v815_v20 = vsel %vm183_vm7, %v809_v44, %v811_v47 }
 0x323   :  { %911 = vmatprep.subr.mxu0 %v815_v20 }
 0x324   :  { %912 = vmatpush1.msra.mxu0 %v816_v18 }
 0x325   :  { %v813_v42 = vpop.permute.xlu1 %812  ;;  %1294 = vmatmul.mubr.msk.f32.vlgmr.msra.gmra.mrb[4].mxu0 %vm191_vm8, %v2349_v59 }
 0x326   :  { %v814_v50 = vsel %vm183_vm7, %v811_v47, %v813_v42  ;;  %v819_v28 = vsel %vm183_vm7, %v813_v42, %v2301_v51 }
 0x327   :  { %982 = vmatprep.subr.mxu1 %v819_v28 }
 0x328   :  { %983 = vmatpush1.msra.mxu1 %v814_v50 }
 0x329   :  { %1295 = vmatmul.mubr.msk.f32.vlgmr.msra.gmra.mrb[4].mxu1 %vm191_vm8, %v2349_v59 }
 0x3e8   :  { %v890_v9 = vpop.f32.mrb[2].mxu1 }
 0x3e9   :  { %v1037_v0 = vmul.f32 %v890_v9, %v2014_v30  ;;  %v892_v25 = vpop.f32.mrb[3].mxu1 }
 0x3ea   :  { %v1038_v48 = vmul.f32 %v892_v25, %v2016_v23 }
 0x3eb   :  { %v1050_v54 = vmul.f32 %v1037_v0, %v1037_v0 }
 0x3ec   :  { %v1043_v60 = vadd.f32 %v1038_v48, %v1037_v0  ;;  %v1051_v13 = vmul.f32 %v1038_v48, %v1038_v48 }
 0x3ee   :  { %v1056_v53 = vadd.f32 %v1051_v13, %v1050_v54 }
 0x3f8   :  { %v961_v58 = vpop.f32.mrb[4].mxu0 }
 0x3f9   :  { %v1039_v52 = vmul.f32 %v961_v58, %v2020_v15  ;;  %v963_v14 = vpop.f32.mrb[5].mxu0 }
 0x3fa   :  { %v1040_v51 = vmul.f32 %v963_v14, %v2022_v19  ;;  %v1094_v19 = vld [vmem:[%s2566_s7] sm:$0xff] }
 0x3fb   :  { %v1044_v21 = vadd.f32 %v1043_v60, %v1039_v52  ;;  %v1052_v63 = vmul.f32 %v1039_v52, %v1039_v52 }
 0x3fc   :  { %v1053_v55 = vmul.f32 %v1040_v51, %v1040_v51  ;;  %v1032_v59 = vpop.f32.mrb[4].mxu1 }
 0x3fd   :  { %v1057_v11 = vadd.f32 %v1056_v53, %v1052_v63  ;;  %v1045_v3 = vadd.f32 %v1044_v21, %v1040_v51  ;;  %v1041_v30 = vmul.f32 %v1032_v59, %v2024_v5  ;;  %v1034_v33 = vpop.f32.mrb[5].mxu1  ;;  %v1082_v5 = vld [vmem:[%s2567_s6] sm:$0xff] }
 0x3fe   :  { %v1042_v23 = vmul.f32 %v1034_v33, %v2027_v36 }
 0x3ff   :  { %v1058_v17 = vadd.f32 %v1057_v11, %v1053_v55  ;;  %v1054_v56 = vmul.f32 %v1041_v30, %v1041_v30  ;;  %v1046_v61 = vadd.f32 %v1045_v3, %v1041_v30 }
 0x400   :  { %v1055_v62 = vmul.f32 %v1042_v23, %v1042_v23 }
 0x401   :  { %v1047_v57 = vadd.f32 %v1046_v61, %v1042_v23  ;;  %v1059_v15 = vadd.f32 %v1058_v17, %v1054_v56 }
 0x403   :  { %1048 = vadd.xlane.f32.xlu0 %v1047_v57  ;;  %v1060_v45 = vadd.f32 %v1059_v15, %v1055_v62 }
 0x405   :  { %1061 = vadd.xlane.f32.xlu1 %v1060_v45 }
 0x416   :  { %1097 = vperm.xlu1 %1493, %v1094_v19  }
 0x419   :  { %1085 = vperm.xlu0 %1492, %v1082_v5  }
 0x490   :  { %v1049_v36 = vpop.xlane.xlu0 %1048 }
 0x491   :  { %v1063_v2 = vmul.f32 0.001953125, %v1049_v36 }
 0x492   :  { %v1062_v24 = vpop.xlane.xlu1 %1061 }
 0x493   :  { %v1064_v4 = vmul.f32 0.001953125, %v1062_v24  ;;  %v1065_v29 = vmul.f32 %v1063_v2, %v1063_v2  ;;  %v1068_v38 = vsub.f32 %v890_v9, %v1063_v2  ;;  %v1069_v46 = vsub.f32 %v892_v25, %v1063_v2 }
 0x494   :  { %v1070_v6 = vsub.f32 %v961_v58, %v1063_v2  ;;  %v1071_v8 = vsub.f32 %v963_v14, %v1063_v2  ;;  %v1072_v39 = vsub.f32 %v1032_v59, %v1063_v2  ;;  %v1073_v31 = vsub.f32 %v1034_v33, %v1063_v2 }
 0x495   :  { %v1066_v22 = vsub.f32 %v1064_v4, %v1065_v29 }
 0x496   :  { %v1098_v12 = vpop.permute.xlu1 %1097 }
 0x497   :  { %v1067_v10 = vmax.f32 %v1066_v22, 0.0 }
 0x498   :  { %v1086_v43 = vpop.permute.xlu0 %1085 }
 0x499   :  { %v1074_v27 = vadd.f32 1e-05, %v1067_v10 }
 0x49b   :  { %1610 = vrsqrt.f32 %v1074_v27 }
 0x4a5   :  { %v1611_v49 = vpop.eup %1610 }
 0x4a6   :  { %v1076_v7 = vmul.f32 %v1611_v49, %v1068_v38  ;;  %v1077_v37 = vmul.f32 %v1611_v49, %v1069_v46  ;;  %v1078_v41 = vmul.f32 %v1611_v49, %v1070_v6  ;;  %v1079_v32 = vmul.f32 %v1611_v49, %v1071_v8 }
 0x4a7   :  { %v1080_v34 = vmul.f32 %v1611_v49, %v1072_v39  ;;  %v1081_v1 = vmul.f32 %v1611_v49, %v1073_v31 }
 0x4a8   :  { %v1088_v40 = vmul.f32 %v1086_v43, %v1076_v7  ;;  %v1089_v16 = vmul.f32 %v1086_v43, %v1077_v37  ;;  %v1090_v26 = vmul.f32 %v1086_v43, %v1078_v41  ;;  %v1091_v35 = vmul.f32 %v1086_v43, %v1079_v32 }
 0x4a9   :  { %v1092_v47 = vmul.f32 %v1086_v43, %v1080_v34  ;;  %v1093_v44 = vmul.f32 %v1086_v43, %v1081_v1 }
 0x4aa   :  { %v2434_v18 = vadd.f32 %v1098_v12, %v1088_v40  ;;  %v2436_v20 = vadd.f32 %v1098_v12, %v1089_v16  ;;  %v2438_v42 = vadd.f32 %v1098_v12, %v1090_v26  ;;  %v2440_v50 = vadd.f32 %v1098_v12, %v1091_v35 }
 0x4ab   :  { %v2442_v28 = vadd.f32 %v1098_v12, %v1092_v47  ;;  %v2444_v9 = vadd.f32 %v1098_v12, %v1093_v44 }
 0x4ac   :  { %v2447_v0 = vmul.f32 0.70710677, %v2434_v18  ;;  %v2450_v25 = vmul.f32 0.70710677, %v2436_v20  ;;  %v2453_v48 = vmul.f32 0.70710677, %v2438_v42 }
 0x4ad   :  { %v2456_v54 = vmul.f32 0.70710677, %v2440_v50  ;;  %v2459_v60 = vmul.f32 0.70710677, %v2442_v28  ;;  %v2462_v13 = vmul.f32 0.70710677, %v2444_v9 }
 0x4ae   :  { %v1118_v53 = vand.u32 2147483647, %v2447_v0  ;;  %v1119_v58 = vand.u32 2147483647, %v2450_v25  ;;  %v1120_v52 = vand.u32 2147483647, %v2453_v48 }
 0x4af   :  { %v1121_v14 = vand.u32 2147483647, %v2456_v54  ;;  %v1122_v51 = vand.u32 2147483647, %v2459_v60  ;;  %v1123_v21 = vand.u32 2147483647, %v2462_v13 }
 0x4b0   :  { %v1124_v63 = vmul.f32 0.3275911, %v1118_v53  ;;  %v1125_v55 = vmul.f32 0.3275911, %v1119_v58  ;;  %v1126_v59 = vmul.f32 0.3275911, %v1120_v52 }
 0x4b1   :  { %v1127_v11 = vmul.f32 0.3275911, %v1121_v14  ;;  %v1128_v3 = vmul.f32 0.3275911, %v1122_v51  ;;  %v1129_v30 = vmul.f32 0.3275911, %v1123_v21 }
 0x4b2   :  { %v1130_v33 = vadd.f32 1.0, %v1124_v63  ;;  %v1131_v23 = vadd.f32 1.0, %v1125_v55  ;;  %v1132_v17 = vadd.f32 1.0, %v1126_v59  ;;  %v1202_v57 = vsub.f32 0.0, %v1118_v53 }
 0x4b3   :  { %v1133_v56 = vadd.f32 1.0, %v1127_v11  ;;  %v1134_v61 = vadd.f32 1.0, %v1128_v3  ;;  %v1135_v62 = vadd.f32 1.0, %v1129_v30  ;;  %v1203_v15 = vsub.f32 0.0, %v1119_v58 }
 0x4b4   :  { %1612 = vrcp.f32 %v1130_v33  ;;  %v1204_v45 = vsub.f32 0.0, %v1120_v52  ;;  %v1205_v19 = vsub.f32 0.0, %v1121_v14  ;;  %v1206_v5 = vsub.f32 0.0, %v1122_v51 }
 0x4b5   :  { %1614 = vrcp.f32 %v1131_v23  ;;  %v1208_v36 = vmul.f32 %v1202_v57, %v1118_v53  ;;  %v1207_v2 = vsub.f32 0.0, %v1123_v21  ;;  %v1209_v24 = vmul.f32 %v1203_v15, %v1119_v58 }
 0x4b6   :  { %1616 = vrcp.f32 %v1132_v17  ;;  %v1210_v29 = vmul.f32 %v1204_v45, %v1120_v52  ;;  %v1211_v27 = vmul.f32 %v1205_v19, %v1121_v14  ;;  %v1212_v6 = vmul.f32 %v1206_v5, %v1122_v51 }
 0x4b7   :  { %1618 = vrcp.f32 %v1133_v56  ;;  %v1214_v8 = vmul.f32 1.442695, %v1208_v36  ;;  %v1213_v7 = vmul.f32 %v1207_v2, %v1123_v21  ;;  %v1216_v37 = vmul.f32 1.442695, %v1209_v24 }
 0x4b8   :  { %1620 = vrcp.f32 %v1134_v61  ;;  %v1218_v1 = vmul.f32 1.442695, %v1210_v29  ;;  %v1220_v35 = vmul.f32 1.442695, %v1211_v27  ;;  %v1222_v53 = vmul.f32 1.442695, %v1212_v6 }
 0x4b9   :  { %1622 = vrcp.f32 %v1135_v62  ;;  %v1224_v51 = vmul.f32 1.442695, %v1213_v7  ;;  %vm1238_vm15 = vcmp.ge.f32.partialorder %v2447_v0, 0.0  ;;  %vm1239_vm0 = vcmp.ge.f32.partialorder %v2450_v25, 0.0 }
 0x4ba   :  { %1624 = vpow2.f32 %v1214_v8  ;;  %vm1240_vm1 = vcmp.ge.f32.partialorder %v2453_v48, 0.0  ;;  %vm1241_vm2 = vcmp.ge.f32.partialorder %v2456_v54, 0.0  ;;  %vm1242_vm3 = vcmp.ge.f32.partialorder %v2459_v60, 0.0 }
 0x4bb   :  { %1626 = vpow2.f32 %v1216_v37  ;;  %vm1243_vm4 = vcmp.ge.f32.partialorder %v2462_v13, 0.0 }
 0x4bc   :  { %1628 = vpow2.f32 %v1218_v1 }
 0x4bd   :  { %1630 = vpow2.f32 %v1220_v35  ;;  %v1108_v35 = vmul.f32 0.5, %v2438_v42 }
 0x4be   :  { %v2470_v4 = vpop.eup %1612  ;;  %1632 = vpow2.f32 %v1222_v53  ;;  %v1109_v53 = vmul.f32 0.5, %v2440_v50 }
 0x4bf   :  { %v2472_v22 = vpop.eup %1614  ;;  %v1148_v10 = vmul.f32 1.0614054, %v2470_v4  ;;  %1634 = vpow2.f32 %v1224_v51 }
 0x4c0   :  { %v2475_v38 = vpop.eup %1616  ;;  %v1149_v46 = vmul.f32 1.0614054, %v2472_v22 }
 0x4c1   :  { %v2478_v49 = vpop.eup %1618  ;;  %v1150_v39 = vmul.f32 1.0614054, %v2475_v38  ;;  %v1154_v31 = vadd.f32 -1.4531521, %v1148_v10 }
 0x4c2   :  { %v2481_v41 = vpop.eup %1620  ;;  %v1151_v32 = vmul.f32 1.0614054, %v2478_v49  ;;  %v1155_v34 = vadd.f32 -1.4531521, %v1149_v46 }
 0x4c3   :  { %v2484_v43 = vpop.eup %1622  ;;  %v1152_v40 = vmul.f32 1.0614054, %v2481_v41  ;;  %v1156_v16 = vadd.f32 -1.4531521, %v1150_v39  ;;  %v1160_v26 = vmul.f32 %v2470_v4, %v1154_v31  ;;  %v1106_v39 = vmul.f32 0.5, %v2434_v18 }
 0x4c4   :  { %v1153_v12 = vmul.f32 1.0614054, %v2484_v43  ;;  %v1157_v47 = vadd.f32 -1.4531521, %v1151_v32  ;;  %v1161_v44 = vmul.f32 %v2472_v22, %v1155_v34  ;;  %v1625_v32 = vpop.eup %1624  ;;  %v1107_v34 = vmul.f32 0.5, %v2436_v20 }
 0x4c5   :  { %v1158_v58 = vadd.f32 -1.4531521, %v1152_v40  ;;  %v1162_v52 = vmul.f32 %v2475_v38, %v1156_v16  ;;  %v1166_v14 = vadd.f32 1.4214138, %v1160_v26  ;;  %v1627_v26 = vpop.eup %1626 }
 0x4c6   :  { %v1159_v21 = vadd.f32 -1.4531521, %v1153_v12  ;;  %v1163_v63 = vmul.f32 %v2478_v49, %v1157_v47  ;;  %v1167_v55 = vadd.f32 1.4214138, %v1161_v44  ;;  %v1629_v44 = vpop.eup %1628 }
 0x4c7   :  { %v1164_v59 = vmul.f32 %v2481_v41, %v1158_v58  ;;  %v1168_v11 = vadd.f32 1.4214138, %v1162_v52  ;;  %v1172_v3 = vmul.f32 %v2470_v4, %v1166_v14  ;;  %v1631_v20 = vpop.eup %1630  ;;  %v1110_v14 = vmul.f32 0.5, %v2442_v28 }
 0x4c8   :  { %v1165_v30 = vmul.f32 %v2484_v43, %v1159_v21  ;;  %v1169_v33 = vadd.f32 1.4214138, %v1163_v63  ;;  %v1173_v23 = vmul.f32 %v2472_v22, %v1167_v55  ;;  %v1633_v63 = vpop.eup %1632 }
 0x4c9   :  { %v1170_v17 = vadd.f32 1.4214138, %v1164_v59  ;;  %v1174_v56 = vmul.f32 %v2475_v38, %v1168_v11  ;;  %v1178_v61 = vadd.f32 -0.28449672, %v1172_v3  ;;  %v1635_v59 = vpop.eup %1634 }
 0x4ca   :  { %v1171_v62 = vadd.f32 1.4214138, %v1165_v30  ;;  %v1175_v57 = vmul.f32 %v2478_v49, %v1169_v33  ;;  %v1179_v15 = vadd.f32 -0.28449672, %v1173_v23 }
 0x4cb   :  { %v1176_v45 = vmul.f32 %v2481_v41, %v1170_v17  ;;  %v1180_v19 = vadd.f32 -0.28449672, %v1174_v56  ;;  %v1184_v5 = vmul.f32 %v2470_v4, %v1178_v61 }
 0x4cc   :  { %v1177_v36 = vmul.f32 %v2484_v43, %v1171_v62  ;;  %v1181_v2 = vadd.f32 -0.28449672, %v1175_v57  ;;  %v1185_v24 = vmul.f32 %v2472_v22, %v1179_v15 }
 0x4cd   :  { %v1182_v29 = vadd.f32 -0.28449672, %v1176_v45  ;;  %v1186_v10 = vmul.f32 %v2475_v38, %v1180_v19  ;;  %v1190_v27 = vadd.f32 0.2548296, %v1184_v5 }
 0x4ce   :  { %v1183_v46 = vadd.f32 -0.28449672, %v1177_v36  ;;  %v1187_v6 = vmul.f32 %v2478_v49, %v1181_v2  ;;  %v1191_v8 = vadd.f32 0.2548296, %v1185_v24 }
 0x4cf   :  { %v1188_v31 = vmul.f32 %v2481_v41, %v1182_v29  ;;  %v1192_v7 = vadd.f32 0.2548296, %v1186_v10  ;;  %v1196_v37 = vmul.f32 %v2470_v4, %v1190_v27  ;;  %v1636_v29 = vld [vmem:[%s2560_s0] sm:$0xff]  ;;  %v1111_v10 = vmul.f32 0.5, %v2444_v9 }
 0x4d0   :  { %v1189_v1 = vmul.f32 %v2484_v43, %v1183_v46  ;;  %v1193_v40 = vadd.f32 0.2548296, %v1187_v6  ;;  %v1197_v16 = vmul.f32 %v2472_v22, %v1191_v8  ;;  %v1637_v6 = vld [vmem:[%s2560_s0 + $0x8] sm:$0xff] }
 0x4d1   :  { %v1194_v12 = vadd.f32 0.2548296, %v1188_v31  ;;  %v1198_v47 = vmul.f32 %v2475_v38, %v1192_v7  ;;  %v1226_v18 = vmul.f32 %v1625_v32, %v1196_v37  ;;  %v1639_v32 = vld [vmem:[%s2560_s0 + $0x18] sm:$0xff] }
 0x4d2   :  { %v1195_v58 = vadd.f32 0.2548296, %v1189_v1  ;;  %v1199_v4 = vmul.f32 %v2478_v49, %v1193_v40  ;;  %v1227_v52 = vmul.f32 %v1627_v26, %v1197_v16  ;;  %v1640_v1 = vld [vmem:[%s2560_s0 + $0x20] sm:$0xff]  ;;  %v1641_v26 = vld [vmem:[%s2560_s0 + $0x28] sm:$0xff] }
 0x4d3   :  { %v1200_v51 = vmul.f32 %v2481_v41, %v1194_v12  ;;  %v1228_v22 = vmul.f32 %v1629_v44, %v1198_v47  ;;  %v1232_v21 = vsub.f32 1.0, %v1226_v18 }
 0x4d4   :  { %v1201_v42 = vmul.f32 %v2484_v43, %v1195_v58  ;;  %v1229_v55 = vmul.f32 %v1631_v20, %v1199_v4  ;;  %v1233_v38 = vsub.f32 1.0, %v1227_v52 }
 0x4d5   :  { %v1230_v50 = vmul.f32 %v1633_v63, %v1200_v51  ;;  %v1234_v11 = vsub.f32 1.0, %v1228_v22  ;;  %v1244_v49 = vsub.f32 0.0, %v1232_v21 }
 0x4d6   :  { %v1231_v3 = vmul.f32 %v1635_v59, %v1201_v42  ;;  %v1235_v30 = vsub.f32 1.0, %v1229_v55  ;;  %v1245_v28 = vsub.f32 0.0, %v1233_v38 }
 0x4d7   :  { %v1236_v41 = vsub.f32 1.0, %v1230_v50  ;;  %v1246_v33 = vsub.f32 0.0, %v1234_v11  ;;  %v1250_v43 = vsel %vm1238_vm15, %v1232_v21, %v1244_v49 }
 0x4d8   :  { %v1237_v23 = vsub.f32 1.0, %v1231_v3  ;;  %v1247_v17 = vsub.f32 0.0, %v1235_v30  ;;  %v1251_v56 = vsel %vm1239_vm0, %v1233_v38, %v1245_v28  ;;  %v1256_v0 = vadd.f32 1.0, %v1250_v43 }
 0x4d9   :  { %v1248_v61 = vsub.f32 0.0, %v1236_v41  ;;  %v1252_v62 = vsel %vm1240_vm1, %v1234_v11, %v1246_v33  ;;  %v1257_v25 = vadd.f32 1.0, %v1251_v56 }
 0x4da   :  { %v1249_v57 = vsub.f32 0.0, %v1237_v23  ;;  %v1253_v15 = vsel %vm1241_vm2, %v1235_v30, %v1247_v17  ;;  %v1258_v45 = vadd.f32 1.0, %v1252_v62  ;;  %v1262_v19 = vmul.f32 %v1256_v0, %v1106_v39  ;;  %v1638_v39 = vld [vmem:[%s2560_s0 + $0x10] sm:$0xff] }
 0x4db   :  { %v1254_v48 = vsel %vm1242_vm3, %v1236_v41, %v1248_v61  ;;  %v1259_v5 = vadd.f32 1.0, %v1253_v15  ;;  %v1263_v54 = vmul.f32 %v1257_v25, %v1107_v34 }
 0x4dc   :  { %v1255_v36 = vsel %vm1243_vm4, %v1237_v23, %v1249_v57  ;;  %v1260_v2 = vadd.f32 1.0, %v1254_v48  ;;  %v1264_v24 = vmul.f32 %v1258_v45, %v1108_v35  ;;  %v1268_v60 = vadd.f32 %v1636_v29, %v1262_v19 }
 0x4dd   :  { %v1261_v27 = vadd.f32 1.0, %v1255_v36  ;;  %v1265_v46 = vmul.f32 %v1259_v5, %v1109_v53  ;;  %v1269_v13 = vadd.f32 %v1637_v6, %v1263_v54 }
 0x4de   :  { %v1266_v8 = vmul.f32 %v1260_v2, %v1110_v14  ;;  %v1270_v31 = vadd.f32 %v1638_v39, %v1264_v24  ;;  %v1274_v7 = vmul.f32 0.7072136, %v1268_v60 }
 0x4df   :  { %v1267_v37 = vmul.f32 %v1261_v27, %v1111_v10  ;;  %v1271_v9 = vadd.f32 %v1639_v32, %v1265_v46  ;;  %v1275_v34 = vmul.f32 0.7072136, %v1269_v13 }
 0x4e0   :  { %v1272_v40 = vadd.f32 %v1640_v1, %v1266_v8  ;;  %v1276_v16 = vmul.f32 0.7072136, %v1270_v31  ;;  %1280 = vst [vmem:[%s2568_s8] sm:$0xff] %v1274_v7 }
 0x4e1   :  { %v1273_v35 = vadd.f32 %v1641_v26, %v1267_v37  ;;  %v1277_v12 = vmul.f32 0.7072136, %v1271_v9  ;;  %1281 = vst [vmem:[%s2568_s8 + $0x8] sm:$0xff] %v1275_v34 }
 0x4e2   :  { %v1278_v47 = vmul.f32 0.7072136, %v1272_v40  ;;  %1282 = vst [vmem:[%s2568_s8 + $0x10] sm:$0xff] %v1276_v16 }
 0x4e3   :  { %v1279_v18 = vmul.f32 0.7072136, %v1273_v35  ;;  %1283 = vst [vmem:[%s2568_s8 + $0x18] sm:$0xff] %v1277_v12 }
 0x4e4   :  { %1284 = vst [vmem:[%s2568_s8 + $0x20] sm:$0xff] %v1278_v47 }
 0x4e5   :  { %1285 = vst [vmem:[%s2568_s8 + $0x28] sm:$0xff] %v1279_v18 }

</bundles_post_ra>
